<compile_context>
chip_gen: v7x
topology: tpu7x:2x2x1
jax: 0.10.0
libtpu: 0.0.40
codegen_flags: <defaults>
</compile_context>

<pallas_src>
import functools

import jax
import jax.numpy as jnp
from jax.experimental import pallas as pl
from jax.experimental.pallas import tpu as pltpu


def _round_up(x, m):
    return (x + m - 1) // m * m


def _default_t_block(L, cap=32):
    """Largest divisor of L that is <= cap (bounds per-block code size)."""
    for t in range(min(L, cap), 0, -1):
        if L % t == 0:
            return t
    return L


def _lstm_kernel(x_ref, wx_ref, wh_ref, bias_ref,
                 out_ref, h_ref, c_ref, xp_ref,
                 *, unroll, hoist_wh):
    """One (batch tile, time block) of the recurrence.

    x_ref   : (T_BLK, B_BLK, F)    bf16  raw inputs, time-major
    wx_ref  : (F, 4Hp)             bf16  input-projection weights (resident)
    wh_ref  : (Hp, 4Hp)            bf16  recurrent weights (resident)
    bias_ref: (1, 4Hp)             f32   fused gate bias
    out_ref : (T_BLK, B_BLK, Hp)         per-step hidden states (time-major)
    h_ref   : (B_BLK, Hp)          f32   h carry (resident across time blocks)
    c_ref   : (B_BLK, Hp)          f32   c carry (resident across time blocks)
    xp_ref  : (T_BLK, B_BLK, 4Hp)  f32   VMEM scratch: x @ Wx + bias
    """
    t_blk = pl.program_id(1)          # time-block index (sequential axis)
    T, Bb, F = x_ref.shape
    Hp = h_ref.shape[-1]

    @pl.when(t_blk == 0)
    def _():
        h_ref[...] = jnp.zeros_like(h_ref)
        c_ref[...] = jnp.zeros_like(c_ref)

    # Fused input projection for the whole time block: one well-shaped MXU
    # matmul (T*B_BLK, F) @ (F, 4Hp), f32 accumulate, bias folded in.
    # (Leading-dim merge is layout-preserving because B_BLK % 8 == 0.)
    x_blk = x_ref[...].reshape(T * Bb, F)
    xp = jnp.dot(x_blk, wx_ref[...], preferred_element_type=jnp.float32)
    xp_ref[...] = xp.reshape(T, Bb, 4 * Hp) + bias_ref[...]

    # Only hold Wh in registers when it fits comfortably (<= ~32 vregs).
    wh_hoisted = wh_ref[...] if hoist_wh else None

    def sigmoid1(z):
        # sigmoid(z) == 0.5*tanh(0.5*z) + 0.5 : one EUP push per gate
        # instead of exp + reciprocal.
        return 0.5 * jnp.tanh(0.5 * z) + 0.5

    def step(i, carry):
        h, c = carry                                          # f32 (B_BLK, Hp)
        wh = wh_hoisted if hoist_wh else wh_ref[...]
        gates = xp_ref[i] + jnp.dot(h.astype(jnp.bfloat16), wh,
                                    preferred_element_type=jnp.float32)
        # Gate order [f, i, c, o]; Hp is a multiple of 128 so every slice
        # falls on a vreg lane boundary.
        ft = sigmoid1(gates[:, 0 * Hp:1 * Hp])
        it = sigmoid1(gates[:, 1 * Hp:2 * Hp])
        cb = jnp.tanh(gates[:, 2 * Hp:3 * Hp])
        ot = sigmoid1(gates[:, 3 * Hp:4 * Hp])
        c_new = ft * c + it * cb
        h_new = ot * jnp.tanh(c_new)
        out_ref[i] = h_new.astype(out_ref.dtype)   # dense (B_BLK, Hp) store
        return h_new, c_new

    h_fin, c_fin = jax.lax.fori_loop(
        0, T, step, (h_ref[...], c_ref[...]), unroll=unroll)
    h_ref[...] = h_fin
    c_ref[...] = c_fin


def _pad_gate_cols(w, H, Hp):
    """Pad each of the 4 H-wide gate column blocks of w[..., 4H] to Hp."""
    if H == Hp:
        return w
    parts = []
    for g in range(4):
        blk = w[..., g * H:(g + 1) * H]
        pad = [(0, 0)] * (w.ndim - 1) + [(0, Hp - H)]
        parts.append(jnp.pad(blk, pad))
    return jnp.concatenate(parts, axis=-1)


@functools.partial(jax.jit, static_argnames=("hidden_size", "t_block", "b_block",
                                             "out_dtype", "vmem_limit_bytes"))
def lstm_forward(x, wx, wh, bias, *, hidden_size, t_block=None, b_block=None,
                 out_dtype=jnp.float32, vmem_limit_bytes=48 * 1024 * 1024):
    """x: (B, L, F) f32. Returns (outputs (B, L, H), (h (B, H), c (B, H)))."""
    B, L, F = x.shape
    H = hidden_size
    Hp = _round_up(H, 128)            # lane-align the gates
    G = 4 * Hp

    if t_block is None:
        t_block = _default_t_block(L)
    assert L % t_block == 0, "sequence length must be a multiple of t_block"
    n_t = L // t_block

    if b_block is None:
        # Single batch tile (best MXU fill on v5e/v6e with their single TC);
        # on v7x pass a smaller b_block (multiple of 8) so n_b >= 2.
        b_block = _round_up(B, 8)
    assert b_block % 8 == 0, "b_block must be a multiple of 8 (sublane)"
    Bp = _round_up(B, b_block)
    n_b = Bp // b_block

    # ---- padded, time-major operands (all layout work fused in XLA) -------
    x_tm = jnp.transpose(x, (1, 0, 2))                       # (L, B, F) - tiny
    if Bp != B:
        x_tm = jnp.pad(x_tm, ((0, 0), (0, Bp - B), (0, 0)))
    x_tm = x_tm.astype(jnp.bfloat16)                         # (L, Bp, F)

    wx_p = _pad_gate_cols(wx, H, Hp).astype(jnp.bfloat16)    # (F, G)
    wh_p = _pad_gate_cols(wh, H, Hp)                         # (H, G)
    if Hp != H:
        wh_p = jnp.pad(wh_p, ((0, Hp - H), (0, 0)))
    wh_p = wh_p.astype(jnp.bfloat16)                         # (Hp, G)
    bias_p = _pad_gate_cols(bias.reshape(1, 4 * H), H, Hp).astype(jnp.float32)

    out_shapes = (
        jax.ShapeDtypeStruct((L, Bp, Hp), out_dtype),   # time-major hidden states
        jax.ShapeDtypeStruct((Bp, Hp), jnp.float32),    # final h
        jax.ShapeDtypeStruct((Bp, Hp), jnp.float32),    # final c
    )

    grid_spec = pltpu.PrefetchScalarGridSpec(
        num_scalar_prefetch=0,
        grid=(n_b, n_t),        # (batch tiles: parallel, time: sequential)
        in_specs=[
            # Raw inputs, time-major block.
            pl.BlockSpec((t_block, b_block, F), lambda b, t: (t, b, 0)),
            # Resident weights / bias (constant index maps).
            pl.BlockSpec((F, G), lambda b, t: (0, 0)),
            pl.BlockSpec((Hp, G), lambda b, t: (0, 0)),
            pl.BlockSpec((1, G), lambda b, t: (0, 0)),
        ],
        out_specs=[
            pl.BlockSpec((t_block, b_block, Hp), lambda b, t: (t, b, 0)),
            pl.BlockSpec((b_block, Hp), lambda b, t: (b, 0)),   # h carry/final
            pl.BlockSpec((b_block, Hp), lambda b, t: (b, 0)),   # c carry/final
        ],
        scratch_shapes=[pltpu.VMEM((t_block, b_block, G), jnp.float32)],
    )

    kernel = functools.partial(
        _lstm_kernel,
        unroll=min(t_block, 8),                      # capped unroll
        hoist_wh=(Hp * G * 2 <= 128 * 1024),         # Wh <= ~32 vregs of bf16
    )

    out_tm, h_fin, c_fin = pl.pallas_call(
        kernel,
        out_shape=out_shapes,
        grid_spec=grid_spec,
        compiler_params=pltpu.CompilerParams(
            dimension_semantics=("parallel", "arbitrary"),
            vmem_limit_bytes=vmem_limit_bytes,
        ),
    )(x_tm, wx_p, wh_p, bias_p)

    # Strip padding; return batch-major (B, L, H) like the PyTorch module.
    out = jnp.transpose(out_tm[:, :B, :H], (1, 0, 2))
    return out, (h_fin[:B, :H], c_fin[:B, :H])


def lstm_reference(x, wx, wh, bias, hidden_size):
    """Pure-JAX f32 reference mirroring the PyTorch forward (eval dropout)."""
    B, L, F = x.shape
    H = hidden_size
    hp = jax.lax.Precision.HIGHEST
    h = jnp.zeros((B, H), jnp.float32)
    c = jnp.zeros((B, H), jnp.float32)
    outs = []
    for i in range(L):
        gates = (jnp.dot(x[:, i, :], wx, precision=hp)
                 + jnp.dot(h, wh, precision=hp) + bias)
        ft = jax.nn.sigmoid(gates[:, 0 * H:1 * H])
        it = jax.nn.sigmoid(gates[:, 1 * H:2 * H])
        c_bar = jnp.tanh(gates[:, 2 * H:3 * H])
        c = ft * c + it * c_bar
        ot = jax.nn.sigmoid(gates[:, 3 * H:4 * H])
        h = ot * jnp.tanh(c)
        outs.append(h)
    return jnp.stack(outs, axis=1), (h, c)


def make_params(key, input_size, hidden_size):
    """Parameter init matching four nn.Linear(F+H, H) layers.

    Each PyTorch Linear has weight (H, F+H) and bias (H,); y = z @ W.T + b with
    z = concat([x_t, h]).  We build the transposed, concatenated form:
      Wx (F, 4H), Wh (H, 4H), bias (1, 4H), gate order [f, i, c, o].
    """
    F, H = input_size, hidden_size
    bound = 1.0 / jnp.sqrt(jnp.float32(F + H))
    keys = jax.random.split(key, 8)
    wx_parts, wh_parts, b_parts = [], [], []
    for g in range(4):
        w = jax.random.uniform(keys[2 * g], (H, F + H), jnp.float32,
                               -bound, bound)          # torch Linear weight
        b = jax.random.uniform(keys[2 * g + 1], (H,), jnp.float32,
                               -bound, bound)          # torch Linear bias
        wt = w.T                                       # (F+H, H)
        wx_parts.append(wt[:F, :])
        wh_parts.append(wt[F:, :])
        b_parts.append(b)
    wx = jnp.concatenate(wx_parts, axis=1)             # (F, 4H)
    wh = jnp.concatenate(wh_parts, axis=1)             # (H, 4H)
    bias = jnp.concatenate(b_parts)[None, :]           # (1, 4H)
    return wx, wh, bias


if __name__ == "__main__":
    B, L, F, H = 2, 16, 4, 32   # t_block=8 -> grid=(1, 2): exercises the carry

    key = jax.random.PRNGKey(0)
    k_x, k_p = jax.random.split(key)
    x = jax.random.normal(k_x, (B, L, F), jnp.float32)
    wx, wh, bias = make_params(k_p, F, H)

    outputs, (h_fin, c_fin) = lstm_forward(x, wx, wh, bias,
                                           hidden_size=H, t_block=8)
    jax.block_until_ready((outputs, h_fin, c_fin))

    ref_out, (ref_h, ref_c) = lstm_reference(x, wx, wh, bias, H)
    assert outputs.shape == (B, L, H)
    assert h_fin.shape == (B, H) and c_fin.shape == (B, H)
    # Kernel uses bf16 matmul operands (f32 accumulate); compare against the
    # pure-f32 reference with a tolerance covering the bf16 rounding.
    assert jnp.allclose(outputs, ref_out, atol=3e-2)
    assert jnp.allclose(h_fin, ref_h, atol=3e-2)
    assert jnp.allclose(c_fin, ref_c, atol=3e-2)

    print("KERNEL_OK")
</pallas_src>

<mosaic_0001>
module attributes {stable_mosaic.version = 11 : i64} {
  func.func @_lstm_kernel(%arg0: i32, %arg1: i32, %arg2: memref<8x8x4xbf16, #tpu.memory_space<vmem>>, %arg3: memref<4x512xbf16, #tpu.memory_space<vmem>>, %arg4: memref<128x512xbf16, #tpu.memory_space<vmem>>, %arg5: memref<1x512xf32, #tpu.memory_space<vmem>>, %arg6: memref<8x8x128xf32, #tpu.memory_space<vmem>>, %arg7: memref<8x128xf32, #tpu.memory_space<vmem>>, %arg8: memref<8x128xf32, #tpu.memory_space<vmem>>, %arg9: memref<8x8x512xf32, #tpu.memory_space<vmem>>) attributes {dimension_semantics = [#tpu.dimension_semantics<parallel>, #tpu.dimension_semantics<arbitrary>], iteration_bounds = array<i64: 1, 2>, scalar_prefetch = 0 : i64, scratch_operands = 1 : i64, tpu.core_type = #tpu.core_type<tc>, window_params = [{transform_indices = @transform_0, window_bounds = array<i64: 8, 8, 4>}, {pipeline_mode = #tpu.pipeline_mode<synchronous>, transform_indices = @transform_1, window_bounds = array<i64: 4, 512>}, {pipeline_mode = #tpu.pipeline_mode<synchronous>, transform_indices = @transform_2, window_bounds = array<i64: 128, 512>}, {pipeline_mode = #tpu.pipeline_mode<synchronous>, transform_indices = @transform_3, window_bounds = array<i64: 1, 512>}, {transform_indices = @transform_4, window_bounds = array<i64: 8, 8, 128>}, {transform_indices = @transform_5, window_bounds = array<i64: 8, 128>}, {transform_indices = @transform_6, window_bounds = array<i64: 8, 128>}]} {
    %c0_i32 = arith.constant 0 : i32
    %0 = arith.cmpi eq, %arg1, %c0_i32 : i32
    %1 = arith.extui %0 : i1 to i32
    %c0_i32_0 = arith.constant 0 : i32
    %2 = arith.cmpi ne, %1, %c0_i32_0 : i32
    scf.if %2 {
      %cst_133 = arith.constant 0.000000e+00 : f32
      %346 = vector.broadcast %cst_133 : f32 to vector<8x128xf32>
      %c0_134 = arith.constant 0 : index
      %c0_135 = arith.constant 0 : index
      %347 = vector.load %arg7[%c0_134, %c0_135] : memref<8x128xf32, #tpu.memory_space<vmem>>, vector<8x128xf32>
      tpu.vector_store %arg7[%c0_134, %c0_135], %346 {strides = array<i32>} : memref<8x128xf32, #tpu.memory_space<vmem>>, vector<8x128xf32>,
      %cst_136 = arith.constant 0.000000e+00 : f32
      %348 = vector.broadcast %cst_136 : f32 to vector<8x128xf32>
      %c0_137 = arith.constant 0 : index
      %c0_138 = arith.constant 0 : index
      %349 = vector.load %arg8[%c0_137, %c0_138] : memref<8x128xf32, #tpu.memory_space<vmem>>, vector<8x128xf32>
      tpu.vector_store %arg8[%c0_137, %c0_138], %348 {strides = array<i32>} : memref<8x128xf32, #tpu.memory_space<vmem>>, vector<8x128xf32>,
    } else {
    }
    %c0 = arith.constant 0 : index
    %c0_1 = arith.constant 0 : index
    %c0_2 = arith.constant 0 : index
    %3 = vector.load %arg2[%c0, %c0_1, %c0_2] : memref<8x8x4xbf16, #tpu.memory_space<vmem>>, vector<8x8x4xbf16>
    %4 = vector.shape_cast %3 : vector<8x8x4xbf16> to vector<64x4xbf16>
    %c0_3 = arith.constant 0 : index
    %c0_4 = arith.constant 0 : index
    %5 = vector.load %arg3[%c0_3, %c0_4] : memref<4x512xbf16, #tpu.memory_space<vmem>>, vector<4x512xbf16>
    %cst = arith.constant dense<0.000000e+00> : vector<64x512xf32>
    %6 = tpu.matmul %4, %5, %cst {dimension_numbers = #tpu.dot_dimension_numbers<[1], [0], [0], [1], [0, 0, 1, 1], [], []>} : vector<64x4xbf16>, vector<4x512xbf16>, vector<64x512xf32> -> vector<64x512xf32>
    %7 = vector.shape_cast %6 : vector<64x512xf32> to vector<8x8x512xf32>
    %c0_5 = arith.constant 0 : index
    %c0_6 = arith.constant 0 : index
    %8 = vector.load %arg5[%c0_5, %c0_6] : memref<1x512xf32, #tpu.memory_space<vmem>>, vector<1x512xf32>
    %9 = vector.shape_cast %8 : vector<1x512xf32> to vector<1x1x512xf32>
    %10 = vector.broadcast %9 : vector<1x1x512xf32> to vector<8x8x512xf32>
    %11 = arith.addf %7, %10 : vector<8x8x512xf32>
    %c0_7 = arith.constant 0 : index
    %c0_8 = arith.constant 0 : index
    %c0_9 = arith.constant 0 : index
    %12 = vector.load %arg9[%c0_7, %c0_8, %c0_9] : memref<8x8x512xf32, #tpu.memory_space<vmem>>, vector<8x8x512xf32>
    tpu.vector_store %arg9[%c0_7, %c0_8, %c0_9], %11 {strides = array<i32>} : memref<8x8x512xf32, #tpu.memory_space<vmem>>, vector<8x8x512xf32>,
    %c0_10 = arith.constant 0 : index
    %c0_11 = arith.constant 0 : index
    %13 = vector.load %arg4[%c0_10, %c0_11] : memref<128x512xbf16, #tpu.memory_space<vmem>>, vector<128x512xbf16>
    %c0_12 = arith.constant 0 : index
    %c0_13 = arith.constant 0 : index
    %14 = vector.load %arg7[%c0_12, %c0_13] : memref<8x128xf32, #tpu.memory_space<vmem>>, vector<8x128xf32>
    %c0_14 = arith.constant 0 : index
    %c0_15 = arith.constant 0 : index
    %15 = vector.load %arg8[%c0_14, %c0_15] : memref<8x128xf32, #tpu.memory_space<vmem>>, vector<8x128xf32>
    %c0_i32_16 = arith.constant 0 : i32
    %16 = arith.index_cast %c0_i32_16 : i32 to index
    %c0_17 = arith.constant 0 : index
    %c0_18 = arith.constant 0 : index
    %17 = vector.load %arg9[%16, %c0_17, %c0_18] : memref<8x8x512xf32, #tpu.memory_space<vmem>>, vector<1x8x512xf32>
    %18 = vector.shape_cast %17 : vector<1x8x512xf32> to vector<8x512xf32>
    %19 = arith.truncf %14 : vector<8x128xf32> to vector<8x128xbf16>
    %cst_19 = arith.constant dense<0.000000e+00> : vector<8x512xf32>
    %20 = tpu.matmul %19, %13, %cst_19 {dimension_numbers = #tpu.dot_dimension_numbers<[1], [0], [0], [1], [0, 0, 1, 1], [], []>} : vector<8x128xbf16>, vector<128x512xbf16>, vector<8x512xf32> -> vector<8x512xf32>
    %21 = arith.addf %18, %20 : vector<8x512xf32>
    %22 = vector.extract_strided_slice %21 {offsets = [0, 0], sizes = [8, 128], strides = [1, 1]} : vector<8x512xf32> to vector<8x128xf32>
    %cst_20 = arith.constant 5.000000e-01 : f32
    %23 = vector.broadcast %cst_20 : f32 to vector<8x128xf32>
    %24 = arith.mulf %23, %22 : vector<8x128xf32>
    %25 = math.tanh %24 : vector<8x128xf32>
    %cst_21 = arith.constant 5.000000e-01 : f32
    %26 = vector.broadcast %cst_21 : f32 to vector<8x128xf32>
    %27 = arith.mulf %26, %25 : vector<8x128xf32>
    %cst_22 = arith.constant 5.000000e-01 : f32
    %28 = vector.broadcast %cst_22 : f32 to vector<8x128xf32>
    %29 = arith.addf %27, %28 : vector<8x128xf32>
    %30 = vector.extract_strided_slice %21 {offsets = [0, 128], sizes = [8, 128], strides = [1, 1]} : vector<8x512xf32> to vector<8x128xf32>
    %cst_23 = arith.constant 5.000000e-01 : f32
    %31 = vector.broadcast %cst_23 : f32 to vector<8x128xf32>
    %32 = arith.mulf %31, %30 : vector<8x128xf32>
    %33 = math.tanh %32 : vector<8x128xf32>
    %cst_24 = arith.constant 5.000000e-01 : f32
    %34 = vector.broadcast %cst_24 : f32 to vector<8x128xf32>
    %35 = arith.mulf %34, %33 : vector<8x128xf32>
    %cst_25 = arith.constant 5.000000e-01 : f32
    %36 = vector.broadcast %cst_25 : f32 to vector<8x128xf32>
    %37 = arith.addf %35, %36 : vector<8x128xf32>
    %38 = vector.extract_strided_slice %21 {offsets = [0, 256], sizes = [8, 128], strides = [1, 1]} : vector<8x512xf32> to vector<8x128xf32>
    %39 = math.tanh %38 : vector<8x128xf32>
    %40 = vector.extract_strided_slice %21 {offsets = [0, 384], sizes = [8, 128], strides = [1, 1]} : vector<8x512xf32> to vector<8x128xf32>
    %cst_26 = arith.constant 5.000000e-01 : f32
    %41 = vector.broadcast %cst_26 : f32 to vector<8x128xf32>
    %42 = arith.mulf %41, %40 : vector<8x128xf32>
    %43 = math.tanh %42 : vector<8x128xf32>
    %cst_27 = arith.constant 5.000000e-01 : f32
    %44 = vector.broadcast %cst_27 : f32 to vector<8x128xf32>
    %45 = arith.mulf %44, %43 : vector<8x128xf32>
    %cst_28 = arith.constant 5.000000e-01 : f32
    %46 = vector.broadcast %cst_28 : f32 to vector<8x128xf32>
    %47 = arith.addf %45, %46 : vector<8x128xf32>
    %48 = arith.mulf %29, %15 : vector<8x128xf32>
    %49 = arith.mulf %37, %39 : vector<8x128xf32>
    %50 = arith.addf %48, %49 : vector<8x128xf32>
    %51 = math.tanh %50 : vector<8x128xf32>
    %52 = arith.mulf %47, %51 : vector<8x128xf32>
    %53 = arith.index_cast %c0_i32_16 : i32 to index
    %c0_29 = arith.constant 0 : index
    %c0_30 = arith.constant 0 : index
    %54 = vector.load %arg6[%53, %c0_29, %c0_30] : memref<8x8x128xf32, #tpu.memory_space<vmem>>, vector<1x8x128xf32>
    %55 = vector.shape_cast %54 : vector<1x8x128xf32> to vector<8x128xf32>
    %56 = vector.shape_cast %52 : vector<8x128xf32> to vector<1x8x128xf32>
    tpu.vector_store %arg6[%53, %c0_29, %c0_30], %56 {strides = array<i32>} : memref<8x8x128xf32, #tpu.memory_space<vmem>>, vector<1x8x128xf32>,
    %c1_i32 = arith.constant 1 : i32
    %57 = arith.index_cast %c1_i32 : i32 to index
    %c0_31 = arith.constant 0 : index
    %c0_32 = arith.constant 0 : index
    %58 = vector.load %arg9[%57, %c0_31, %c0_32] : memref<8x8x512xf32, #tpu.memory_space<vmem>>, vector<1x8x512xf32>
    %59 = vector.shape_cast %58 : vector<1x8x512xf32> to vector<8x512xf32>
    %60 = arith.truncf %52 : vector<8x128xf32> to vector<8x128xbf16>
    %cst_33 = arith.constant dense<0.000000e+00> : vector<8x512xf32>
    %61 = tpu.matmul %60, %13, %cst_33 {dimension_numbers = #tpu.dot_dimension_numbers<[1], [0], [0], [1], [0, 0, 1, 1], [], []>} : vector<8x128xbf16>, vector<128x512xbf16>, vector<8x512xf32> -> vector<8x512xf32>
    %62 = arith.addf %59, %61 : vector<8x512xf32>
    %63 = vector.extract_strided_slice %62 {offsets = [0, 0], sizes = [8, 128], strides = [1, 1]} : vector<8x512xf32> to vector<8x128xf32>
    %cst_34 = arith.constant 5.000000e-01 : f32
    %64 = vector.broadcast %cst_34 : f32 to vector<8x128xf32>
    %65 = arith.mulf %64, %63 : vector<8x128xf32>
    %66 = math.tanh %65 : vector<8x128xf32>
    %cst_35 = arith.constant 5.000000e-01 : f32
    %67 = vector.broadcast %cst_35 : f32 to vector<8x128xf32>
    %68 = arith.mulf %67, %66 : vector<8x128xf32>
    %cst_36 = arith.constant 5.000000e-01 : f32
    %69 = vector.broadcast %cst_36 : f32 to vector<8x128xf32>
    %70 = arith.addf %68, %69 : vector<8x128xf32>
    %71 = vector.extract_strided_slice %62 {offsets = [0, 128], sizes = [8, 128], strides = [1, 1]} : vector<8x512xf32> to vector<8x128xf32>
    %cst_37 = arith.constant 5.000000e-01 : f32
    %72 = vector.broadcast %cst_37 : f32 to vector<8x128xf32>
    %73 = arith.mulf %72, %71 : vector<8x128xf32>
    %74 = math.tanh %73 : vector<8x128xf32>
    %cst_38 = arith.constant 5.000000e-01 : f32
    %75 = vector.broadcast %cst_38 : f32 to vector<8x128xf32>
    %76 = arith.mulf %75, %74 : vector<8x128xf32>
    %cst_39 = arith.constant 5.000000e-01 : f32
    %77 = vector.broadcast %cst_39 : f32 to vector<8x128xf32>
    %78 = arith.addf %76, %77 : vector<8x128xf32>
    %79 = vector.extract_strided_slice %62 {offsets = [0, 256], sizes = [8, 128], strides = [1, 1]} : vector<8x512xf32> to vector<8x128xf32>
    %80 = math.tanh %79 : vector<8x128xf32>
    %81 = vector.extract_strided_slice %62 {offsets = [0, 384], sizes = [8, 128], strides = [1, 1]} : vector<8x512xf32> to vector<8x128xf32>
    %cst_40 = arith.constant 5.000000e-01 : f32
    %82 = vector.broadcast %cst_40 : f32 to vector<8x128xf32>
    %83 = arith.mulf %82, %81 : vector<8x128xf32>
    %84 = math.tanh %83 : vector<8x128xf32>
    %cst_41 = arith.constant 5.000000e-01 : f32
    %85 = vector.broadcast %cst_41 : f32 to vector<8x128xf32>
    %86 = arith.mulf %85, %84 : vector<8x128xf32>
    %cst_42 = arith.constant 5.000000e-01 : f32
    %87 = vector.broadcast %cst_42 : f32 to vector<8x128xf32>
    %88 = arith.addf %86, %87 : vector<8x128xf32>
    %89 = arith.mulf %70, %50 : vector<8x128xf32>
    %90 = arith.mulf %78, %80 : vector<8x128xf32>
    %91 = arith.addf %89, %90 : vector<8x128xf32>
    %92 = math.tanh %91 : vector<8x128xf32>
    %93 = arith.mulf %88, %92 : vector<8x128xf32>
    %94 = arith.index_cast %c1_i32 : i32 to index
    %c0_43 = arith.constant 0 : index
    %c0_44 = arith.constant 0 : index
    %95 = vector.load %arg6[%94, %c0_43, %c0_44] : memref<8x8x128xf32, #tpu.memory_space<vmem>>, vector<1x8x128xf32>
    %96 = vector.shape_cast %95 : vector<1x8x128xf32> to vector<8x128xf32>
    %97 = vector.shape_cast %93 : vector<8x128xf32> to vector<1x8x128xf32>
    tpu.vector_store %arg6[%94, %c0_43, %c0_44], %97 {strides = array<i32>} : memref<8x8x128xf32, #tpu.memory_space<vmem>>, vector<1x8x128xf32>,
    %c2_i32 = arith.constant 2 : i32
    %98 = arith.index_cast %c2_i32 : i32 to index
    %c0_45 = arith.constant 0 : index
    %c0_46 = arith.constant 0 : index
    %99 = vector.load %arg9[%98, %c0_45, %c0_46] : memref<8x8x512xf32, #tpu.memory_space<vmem>>, vector<1x8x512xf32>
    %100 = vector.shape_cast %99 : vector<1x8x512xf32> to vector<8x512xf32>
    %101 = arith.truncf %93 : vector<8x128xf32> to vector<8x128xbf16>
    %cst_47 = arith.constant dense<0.000000e+00> : vector<8x512xf32>
    %102 = tpu.matmul %101, %13, %cst_47 {dimension_numbers = #tpu.dot_dimension_numbers<[1], [0], [0], [1], [0, 0, 1, 1], [], []>} : vector<8x128xbf16>, vector<128x512xbf16>, vector<8x512xf32> -> vector<8x512xf32>
    %103 = arith.addf %100, %102 : vector<8x512xf32>
    %104 = vector.extract_strided_slice %103 {offsets = [0, 0], sizes = [8, 128], strides = [1, 1]} : vector<8x512xf32> to vector<8x128xf32>
    %cst_48 = arith.constant 5.000000e-01 : f32
    %105 = vector.broadcast %cst_48 : f32 to vector<8x128xf32>
    %106 = arith.mulf %105, %104 : vector<8x128xf32>
    %107 = math.tanh %106 : vector<8x128xf32>
    %cst_49 = arith.constant 5.000000e-01 : f32
    %108 = vector.broadcast %cst_49 : f32 to vector<8x128xf32>
    %109 = arith.mulf %108, %107 : vector<8x128xf32>
    %cst_50 = arith.constant 5.000000e-01 : f32
    %110 = vector.broadcast %cst_50 : f32 to vector<8x128xf32>
    %111 = arith.addf %109, %110 : vector<8x128xf32>
    %112 = vector.extract_strided_slice %103 {offsets = [0, 128], sizes = [8, 128], strides = [1, 1]} : vector<8x512xf32> to vector<8x128xf32>
    %cst_51 = arith.constant 5.000000e-01 : f32
    %113 = vector.broadcast %cst_51 : f32 to vector<8x128xf32>
    %114 = arith.mulf %113, %112 : vector<8x128xf32>
    %115 = math.tanh %114 : vector<8x128xf32>
    %cst_52 = arith.constant 5.000000e-01 : f32
    %116 = vector.broadcast %cst_52 : f32 to vector<8x128xf32>
    %117 = arith.mulf %116, %115 : vector<8x128xf32>
    %cst_53 = arith.constant 5.000000e-01 : f32
    %118 = vector.broadcast %cst_53 : f32 to vector<8x128xf32>
    %119 = arith.addf %117, %118 : vector<8x128xf32>
    %120 = vector.extract_strided_slice %103 {offsets = [0, 256], sizes = [8, 128], strides = [1, 1]} : vector<8x512xf32> to vector<8x128xf32>
    %121 = math.tanh %120 : vector<8x128xf32>
    %122 = vector.extract_strided_slice %103 {offsets = [0, 384], sizes = [8, 128], strides = [1, 1]} : vector<8x512xf32> to vector<8x128xf32>
    %cst_54 = arith.constant 5.000000e-01 : f32
    %123 = vector.broadcast %cst_54 : f32 to vector<8x128xf32>
    %124 = arith.mulf %123, %122 : vector<8x128xf32>
    %125 = math.tanh %124 : vector<8x128xf32>
    %cst_55 = arith.constant 5.000000e-01 : f32
    %126 = vector.broadcast %cst_55 : f32 to vector<8x128xf32>
    %127 = arith.mulf %126, %125 : vector<8x128xf32>
    %cst_56 = arith.constant 5.000000e-01 : f32
    %128 = vector.broadcast %cst_56 : f32 to vector<8x128xf32>
    %129 = arith.addf %127, %128 : vector<8x128xf32>
    %130 = arith.mulf %111, %91 : vector<8x128xf32>
    %131 = arith.mulf %119, %121 : vector<8x128xf32>
    %132 = arith.addf %130, %131 : vector<8x128xf32>
    %133 = math.tanh %132 : vector<8x128xf32>
    %134 = arith.mulf %129, %133 : vector<8x128xf32>
    %135 = arith.index_cast %c2_i32 : i32 to index
    %c0_57 = arith.constant 0 : index
    %c0_58 = arith.constant 0 : index
    %136 = vector.load %arg6[%135, %c0_57, %c0_58] : memref<8x8x128xf32, #tpu.memory_space<vmem>>, vector<1x8x128xf32>
    %137 = vector.shape_cast %136 : vector<1x8x128xf32> to vector<8x128xf32>
    %138 = vector.shape_cast %134 : vector<8x128xf32> to vector<1x8x128xf32>
    tpu.vector_store %arg6[%135, %c0_57, %c0_58], %138 {strides = array<i32>} : memref<8x8x128xf32, #tpu.memory_space<vmem>>, vector<1x8x128xf32>,
    %c3_i32 = arith.constant 3 : i32
    %139 = arith.index_cast %c3_i32 : i32 to index
    %c0_59 = arith.constant 0 : index
    %c0_60 = arith.constant 0 : index
    %140 = vector.load %arg9[%139, %c0_59, %c0_60] : memref<8x8x512xf32, #tpu.memory_space<vmem>>, vector<1x8x512xf32>
    %141 = vector.shape_cast %140 : vector<1x8x512xf32> to vector<8x512xf32>
    %142 = arith.truncf %134 : vector<8x128xf32> to vector<8x128xbf16>
    %cst_61 = arith.constant dense<0.000000e+00> : vector<8x512xf32>
    %143 = tpu.matmul %142, %13, %cst_61 {dimension_numbers = #tpu.dot_dimension_numbers<[1], [0], [0], [1], [0, 0, 1, 1], [], []>} : vector<8x128xbf16>, vector<128x512xbf16>, vector<8x512xf32> -> vector<8x512xf32>
    %144 = arith.addf %141, %143 : vector<8x512xf32>
    %145 = vector.extract_strided_slice %144 {offsets = [0, 0], sizes = [8, 128], strides = [1, 1]} : vector<8x512xf32> to vector<8x128xf32>
    %cst_62 = arith.constant 5.000000e-01 : f32
    %146 = vector.broadcast %cst_62 : f32 to vector<8x128xf32>
    %147 = arith.mulf %146, %145 : vector<8x128xf32>
    %148 = math.tanh %147 : vector<8x128xf32>
    %cst_63 = arith.constant 5.000000e-01 : f32
    %149 = vector.broadcast %cst_63 : f32 to vector<8x128xf32>
    %150 = arith.mulf %149, %148 : vector<8x128xf32>
    %cst_64 = arith.constant 5.000000e-01 : f32
    %151 = vector.broadcast %cst_64 : f32 to vector<8x128xf32>
    %152 = arith.addf %150, %151 : vector<8x128xf32>
    %153 = vector.extract_strided_slice %144 {offsets = [0, 128], sizes = [8, 128], strides = [1, 1]} : vector<8x512xf32> to vector<8x128xf32>
    %cst_65 = arith.constant 5.000000e-01 : f32
    %154 = vector.broadcast %cst_65 : f32 to vector<8x128xf32>
    %155 = arith.mulf %154, %153 : vector<8x128xf32>
    %156 = math.tanh %155 : vector<8x128xf32>
    %cst_66 = arith.constant 5.000000e-01 : f32
    %157 = vector.broadcast %cst_66 : f32 to vector<8x128xf32>
    %158 = arith.mulf %157, %156 : vector<8x128xf32>
    %cst_67 = arith.constant 5.000000e-01 : f32
    %159 = vector.broadcast %cst_67 : f32 to vector<8x128xf32>
    %160 = arith.addf %158, %159 : vector<8x128xf32>
    %161 = vector.extract_strided_slice %144 {offsets = [0, 256], sizes = [8, 128], strides = [1, 1]} : vector<8x512xf32> to vector<8x128xf32>
    %162 = math.tanh %161 : vector<8x128xf32>
    %163 = vector.extract_strided_slice %144 {offsets = [0, 384], sizes = [8, 128], strides = [1, 1]} : vector<8x512xf32> to vector<8x128xf32>
    %cst_68 = arith.constant 5.000000e-01 : f32
    %164 = vector.broadcast %cst_68 : f32 to vector<8x128xf32>
    %165 = arith.mulf %164, %163 : vector<8x128xf32>
    %166 = math.tanh %165 : vector<8x128xf32>
    %cst_69 = arith.constant 5.000000e-01 : f32
    %167 = vector.broadcast %cst_69 : f32 to vector<8x128xf32>
    %168 = arith.mulf %167, %166 : vector<8x128xf32>
    %cst_70 = arith.constant 5.000000e-01 : f32
    %169 = vector.broadcast %cst_70 : f32 to vector<8x128xf32>
    %170 = arith.addf %168, %169 : vector<8x128xf32>
    %171 = arith.mulf %152, %132 : vector<8x128xf32>
    %172 = arith.mulf %160, %162 : vector<8x128xf32>
    %173 = arith.addf %171, %172 : vector<8x128xf32>
    %174 = math.tanh %173 : vector<8x128xf32>
    %175 = arith.mulf %170, %174 : vector<8x128xf32>
    %176 = arith.index_cast %c3_i32 : i32 to index
    %c0_71 = arith.constant 0 : index
    %c0_72 = arith.constant 0 : index
    %177 = vector.load %arg6[%176, %c0_71, %c0_72] : memref<8x8x128xf32, #tpu.memory_space<vmem>>, vector<1x8x128xf32>
    %178 = vector.shape_cast %177 : vector<1x8x128xf32> to vector<8x128xf32>
    %179 = vector.shape_cast %175 : vector<8x128xf32> to vector<1x8x128xf32>
    tpu.vector_store %arg6[%176, %c0_71, %c0_72], %179 {strides = array<i32>} : memref<8x8x128xf32, #tpu.memory_space<vmem>>, vector<1x8x128xf32>,
    %c4_i32 = arith.constant 4 : i32
    %180 = arith.index_cast %c4_i32 : i32 to index
    %c0_73 = arith.constant 0 : index
    %c0_74 = arith.constant 0 : index
    %181 = vector.load %arg9[%180, %c0_73, %c0_74] : memref<8x8x512xf32, #tpu.memory_space<vmem>>, vector<1x8x512xf32>
    %182 = vector.shape_cast %181 : vector<1x8x512xf32> to vector<8x512xf32>
    %183 = arith.truncf %175 : vector<8x128xf32> to vector<8x128xbf16>
    %cst_75 = arith.constant dense<0.000000e+00> : vector<8x512xf32>
    %184 = tpu.matmul %183, %13, %cst_75 {dimension_numbers = #tpu.dot_dimension_numbers<[1], [0], [0], [1], [0, 0, 1, 1], [], []>} : vector<8x128xbf16>, vector<128x512xbf16>, vector<8x512xf32> -> vector<8x512xf32>
    %185 = arith.addf %182, %184 : vector<8x512xf32>
    %186 = vector.extract_strided_slice %185 {offsets = [0, 0], sizes = [8, 128], strides = [1, 1]} : vector<8x512xf32> to vector<8x128xf32>
    %cst_76 = arith.constant 5.000000e-01 : f32
    %187 = vector.broadcast %cst_76 : f32 to vector<8x128xf32>
    %188 = arith.mulf %187, %186 : vector<8x128xf32>
    %189 = math.tanh %188 : vector<8x128xf32>
    %cst_77 = arith.constant 5.000000e-01 : f32
    %190 = vector.broadcast %cst_77 : f32 to vector<8x128xf32>
    %191 = arith.mulf %190, %189 : vector<8x128xf32>
    %cst_78 = arith.constant 5.000000e-01 : f32
    %192 = vector.broadcast %cst_78 : f32 to vector<8x128xf32>
    %193 = arith.addf %191, %192 : vector<8x128xf32>
    %194 = vector.extract_strided_slice %185 {offsets = [0, 128], sizes = [8, 128], strides = [1, 1]} : vector<8x512xf32> to vector<8x128xf32>
    %cst_79 = arith.constant 5.000000e-01 : f32
    %195 = vector.broadcast %cst_79 : f32 to vector<8x128xf32>
    %196 = arith.mulf %195, %194 : vector<8x128xf32>
    %197 = math.tanh %196 : vector<8x128xf32>
    %cst_80 = arith.constant 5.000000e-01 : f32
    %198 = vector.broadcast %cst_80 : f32 to vector<8x128xf32>
    %199 = arith.mulf %198, %197 : vector<8x128xf32>
    %cst_81 = arith.constant 5.000000e-01 : f32
    %200 = vector.broadcast %cst_81 : f32 to vector<8x128xf32>
    %201 = arith.addf %199, %200 : vector<8x128xf32>
    %202 = vector.extract_strided_slice %185 {offsets = [0, 256], sizes = [8, 128], strides = [1, 1]} : vector<8x512xf32> to vector<8x128xf32>
    %203 = math.tanh %202 : vector<8x128xf32>
    %204 = vector.extract_strided_slice %185 {offsets = [0, 384], sizes = [8, 128], strides = [1, 1]} : vector<8x512xf32> to vector<8x128xf32>
    %cst_82 = arith.constant 5.000000e-01 : f32
    %205 = vector.broadcast %cst_82 : f32 to vector<8x128xf32>
    %206 = arith.mulf %205, %204 : vector<8x128xf32>
    %207 = math.tanh %206 : vector<8x128xf32>
    %cst_83 = arith.constant 5.000000e-01 : f32
    %208 = vector.broadcast %cst_83 : f32 to vector<8x128xf32>
    %209 = arith.mulf %208, %207 : vector<8x128xf32>
    %cst_84 = arith.constant 5.000000e-01 : f32
    %210 = vector.broadcast %cst_84 : f32 to vector<8x128xf32>
    %211 = arith.addf %209, %210 : vector<8x128xf32>
    %212 = arith.mulf %193, %173 : vector<8x128xf32>
    %213 = arith.mulf %201, %203 : vector<8x128xf32>
    %214 = arith.addf %212, %213 : vector<8x128xf32>
    %215 = math.tanh %214 : vector<8x128xf32>
    %216 = arith.mulf %211, %215 : vector<8x128xf32>
    %217 = arith.index_cast %c4_i32 : i32 to index
    %c0_85 = arith.constant 0 : index
    %c0_86 = arith.constant 0 : index
    %218 = vector.load %arg6[%217, %c0_85, %c0_86] : memref<8x8x128xf32, #tpu.memory_space<vmem>>, vector<1x8x128xf32>
    %219 = vector.shape_cast %218 : vector<1x8x128xf32> to vector<8x128xf32>
    %220 = vector.shape_cast %216 : vector<8x128xf32> to vector<1x8x128xf32>
    tpu.vector_store %arg6[%217, %c0_85, %c0_86], %220 {strides = array<i32>} : memref<8x8x128xf32, #tpu.memory_space<vmem>>, vector<1x8x128xf32>,
    %c5_i32 = arith.constant 5 : i32
    %221 = arith.index_cast %c5_i32 : i32 to index
    %c0_87 = arith.constant 0 : index
    %c0_88 = arith.constant 0 : index
    %222 = vector.load %arg9[%221, %c0_87, %c0_88] : memref<8x8x512xf32, #tpu.memory_space<vmem>>, vector<1x8x512xf32>
    %223 = vector.shape_cast %222 : vector<1x8x512xf32> to vector<8x512xf32>
    %224 = arith.truncf %216 : vector<8x128xf32> to vector<8x128xbf16>
    %cst_89 = arith.constant dense<0.000000e+00> : vector<8x512xf32>
    %225 = tpu.matmul %224, %13, %cst_89 {dimension_numbers = #tpu.dot_dimension_numbers<[1], [0], [0], [1], [0, 0, 1, 1], [], []>} : vector<8x128xbf16>, vector<128x512xbf16>, vector<8x512xf32> -> vector<8x512xf32>
    %226 = arith.addf %223, %225 : vector<8x512xf32>
    %227 = vector.extract_strided_slice %226 {offsets = [0, 0], sizes = [8, 128], strides = [1, 1]} : vector<8x512xf32> to vector<8x128xf32>
    %cst_90 = arith.constant 5.000000e-01 : f32
    %228 = vector.broadcast %cst_90 : f32 to vector<8x128xf32>
    %229 = arith.mulf %228, %227 : vector<8x128xf32>
    %230 = math.tanh %229 : vector<8x128xf32>
    %cst_91 = arith.constant 5.000000e-01 : f32
    %231 = vector.broadcast %cst_91 : f32 to vector<8x128xf32>
    %232 = arith.mulf %231, %230 : vector<8x128xf32>
    %cst_92 = arith.constant 5.000000e-01 : f32
    %233 = vector.broadcast %cst_92 : f32 to vector<8x128xf32>
    %234 = arith.addf %232, %233 : vector<8x128xf32>
    %235 = vector.extract_strided_slice %226 {offsets = [0, 128], sizes = [8, 128], strides = [1, 1]} : vector<8x512xf32> to vector<8x128xf32>
    %cst_93 = arith.constant 5.000000e-01 : f32
    %236 = vector.broadcast %cst_93 : f32 to vector<8x128xf32>
    %237 = arith.mulf %236, %235 : vector<8x128xf32>
    %238 = math.tanh %237 : vector<8x128xf32>
    %cst_94 = arith.constant 5.000000e-01 : f32
    %239 = vector.broadcast %cst_94 : f32 to vector<8x128xf32>
    %240 = arith.mulf %239, %238 : vector<8x128xf32>
    %cst_95 = arith.constant 5.000000e-01 : f32
    %241 = vector.broadcast %cst_95 : f32 to vector<8x128xf32>
    %242 = arith.addf %240, %241 : vector<8x128xf32>
    %243 = vector.extract_strided_slice %226 {offsets = [0, 256], sizes = [8, 128], strides = [1, 1]} : vector<8x512xf32> to vector<8x128xf32>
    %244 = math.tanh %243 : vector<8x128xf32>
    %245 = vector.extract_strided_slice %226 {offsets = [0, 384], sizes = [8, 128], strides = [1, 1]} : vector<8x512xf32> to vector<8x128xf32>
    %cst_96 = arith.constant 5.000000e-01 : f32
    %246 = vector.broadcast %cst_96 : f32 to vector<8x128xf32>
    %247 = arith.mulf %246, %245 : vector<8x128xf32>
    %248 = math.tanh %247 : vector<8x128xf32>
    %cst_97 = arith.constant 5.000000e-01 : f32
    %249 = vector.broadcast %cst_97 : f32 to vector<8x128xf32>
    %250 = arith.mulf %249, %248 : vector<8x128xf32>
    %cst_98 = arith.constant 5.000000e-01 : f32
    %251 = vector.broadcast %cst_98 : f32 to vector<8x128xf32>
    %252 = arith.addf %250, %251 : vector<8x128xf32>
    %253 = arith.mulf %234, %214 : vector<8x128xf32>
    %254 = arith.mulf %242, %244 : vector<8x128xf32>
    %255 = arith.addf %253, %254 : vector<8x128xf32>
    %256 = math.tanh %255 : vector<8x128xf32>
    %257 = arith.mulf %252, %256 : vector<8x128xf32>
    %258 = arith.index_cast %c5_i32 : i32 to index
    %c0_99 = arith.constant 0 : index
    %c0_100 = arith.constant 0 : index
    %259 = vector.load %arg6[%258, %c0_99, %c0_100] : memref<8x8x128xf32, #tpu.memory_space<vmem>>, vector<1x8x128xf32>
    %260 = vector.shape_cast %259 : vector<1x8x128xf32> to vector<8x128xf32>
    %261 = vector.shape_cast %257 : vector<8x128xf32> to vector<1x8x128xf32>
    tpu.vector_store %arg6[%258, %c0_99, %c0_100], %261 {strides = array<i32>} : memref<8x8x128xf32, #tpu.memory_space<vmem>>, vector<1x8x128xf32>,
    %c6_i32 = arith.constant 6 : i32
    %262 = arith.index_cast %c6_i32 : i32 to index
    %c0_101 = arith.constant 0 : index
    %c0_102 = arith.constant 0 : index
    %263 = vector.load %arg9[%262, %c0_101, %c0_102] : memref<8x8x512xf32, #tpu.memory_space<vmem>>, vector<1x8x512xf32>
    %264 = vector.shape_cast %263 : vector<1x8x512xf32> to vector<8x512xf32>
    %265 = arith.truncf %257 : vector<8x128xf32> to vector<8x128xbf16>
    %cst_103 = arith.constant dense<0.000000e+00> : vector<8x512xf32>
    %266 = tpu.matmul %265, %13, %cst_103 {dimension_numbers = #tpu.dot_dimension_numbers<[1], [0], [0], [1], [0, 0, 1, 1], [], []>} : vector<8x128xbf16>, vector<128x512xbf16>, vector<8x512xf32> -> vector<8x512xf32>
    %267 = arith.addf %264, %266 : vector<8x512xf32>
    %268 = vector.extract_strided_slice %267 {offsets = [0, 0], sizes = [8, 128], strides = [1, 1]} : vector<8x512xf32> to vector<8x128xf32>
    %cst_104 = arith.constant 5.000000e-01 : f32
    %269 = vector.broadcast %cst_104 : f32 to vector<8x128xf32>
    %270 = arith.mulf %269, %268 : vector<8x128xf32>
    %271 = math.tanh %270 : vector<8x128xf32>
    %cst_105 = arith.constant 5.000000e-01 : f32
    %272 = vector.broadcast %cst_105 : f32 to vector<8x128xf32>
    %273 = arith.mulf %272, %271 : vector<8x128xf32>
    %cst_106 = arith.constant 5.000000e-01 : f32
    %274 = vector.broadcast %cst_106 : f32 to vector<8x128xf32>
    %275 = arith.addf %273, %274 : vector<8x128xf32>
    %276 = vector.extract_strided_slice %267 {offsets = [0, 128], sizes = [8, 128], strides = [1, 1]} : vector<8x512xf32> to vector<8x128xf32>
    %cst_107 = arith.constant 5.000000e-01 : f32
    %277 = vector.broadcast %cst_107 : f32 to vector<8x128xf32>
    %278 = arith.mulf %277, %276 : vector<8x128xf32>
    %279 = math.tanh %278 : vector<8x128xf32>
    %cst_108 = arith.constant 5.000000e-01 : f32
    %280 = vector.broadcast %cst_108 : f32 to vector<8x128xf32>
    %281 = arith.mulf %280, %279 : vector<8x128xf32>
    %cst_109 = arith.constant 5.000000e-01 : f32
    %282 = vector.broadcast %cst_109 : f32 to vector<8x128xf32>
    %283 = arith.addf %281, %282 : vector<8x128xf32>
    %284 = vector.extract_strided_slice %267 {offsets = [0, 256], sizes = [8, 128], strides = [1, 1]} : vector<8x512xf32> to vector<8x128xf32>
    %285 = math.tanh %284 : vector<8x128xf32>
    %286 = vector.extract_strided_slice %267 {offsets = [0, 384], sizes = [8, 128], strides = [1, 1]} : vector<8x512xf32> to vector<8x128xf32>
    %cst_110 = arith.constant 5.000000e-01 : f32
    %287 = vector.broadcast %cst_110 : f32 to vector<8x128xf32>
    %288 = arith.mulf %287, %286 : vector<8x128xf32>
    %289 = math.tanh %288 : vector<8x128xf32>
    %cst_111 = arith.constant 5.000000e-01 : f32
    %290 = vector.broadcast %cst_111 : f32 to vector<8x128xf32>
    %291 = arith.mulf %290, %289 : vector<8x128xf32>
    %cst_112 = arith.constant 5.000000e-01 : f32
    %292 = vector.broadcast %cst_112 : f32 to vector<8x128xf32>
    %293 = arith.addf %291, %292 : vector<8x128xf32>
    %294 = arith.mulf %275, %255 : vector<8x128xf32>
    %295 = arith.mulf %283, %285 : vector<8x128xf32>
    %296 = arith.addf %294, %295 : vector<8x128xf32>
    %297 = math.tanh %296 : vector<8x128xf32>
    %298 = arith.mulf %293, %297 : vector<8x128xf32>
    %299 = arith.index_cast %c6_i32 : i32 to index
    %c0_113 = arith.constant 0 : index
    %c0_114 = arith.constant 0 : index
    %300 = vector.load %arg6[%299, %c0_113, %c0_114] : memref<8x8x128xf32, #tpu.memory_space<vmem>>, vector<1x8x128xf32>
    %301 = vector.shape_cast %300 : vector<1x8x128xf32> to vector<8x128xf32>
    %302 = vector.shape_cast %298 : vector<8x128xf32> to vector<1x8x128xf32>
    tpu.vector_store %arg6[%299, %c0_113, %c0_114], %302 {strides = array<i32>} : memref<8x8x128xf32, #tpu.memory_space<vmem>>, vector<1x8x128xf32>,
    %c7_i32 = arith.constant 7 : i32
    %303 = arith.index_cast %c7_i32 : i32 to index
    %c0_115 = arith.constant 0 : index
    %c0_116 = arith.constant 0 : index
    %304 = vector.load %arg9[%303, %c0_115, %c0_116] : memref<8x8x512xf32, #tpu.memory_space<vmem>>, vector<1x8x512xf32>
    %305 = vector.shape_cast %304 : vector<1x8x512xf32> to vector<8x512xf32>
    %306 = arith.truncf %298 : vector<8x128xf32> to vector<8x128xbf16>
    %cst_117 = arith.constant dense<0.000000e+00> : vector<8x512xf32>
    %307 = tpu.matmul %306, %13, %cst_117 {dimension_numbers = #tpu.dot_dimension_numbers<[1], [0], [0], [1], [0, 0, 1, 1], [], []>} : vector<8x128xbf16>, vector<128x512xbf16>, vector<8x512xf32> -> vector<8x512xf32>
    %308 = arith.addf %305, %307 : vector<8x512xf32>
    %309 = vector.extract_strided_slice %308 {offsets = [0, 0], sizes = [8, 128], strides = [1, 1]} : vector<8x512xf32> to vector<8x128xf32>
    %cst_118 = arith.constant 5.000000e-01 : f32
    %310 = vector.broadcast %cst_118 : f32 to vector<8x128xf32>
    %311 = arith.mulf %310, %309 : vector<8x128xf32>
    %312 = math.tanh %311 : vector<8x128xf32>
    %cst_119 = arith.constant 5.000000e-01 : f32
    %313 = vector.broadcast %cst_119 : f32 to vector<8x128xf32>
    %314 = arith.mulf %313, %312 : vector<8x128xf32>
    %cst_120 = arith.constant 5.000000e-01 : f32
    %315 = vector.broadcast %cst_120 : f32 to vector<8x128xf32>
    %316 = arith.addf %314, %315 : vector<8x128xf32>
    %317 = vector.extract_strided_slice %308 {offsets = [0, 128], sizes = [8, 128], strides = [1, 1]} : vector<8x512xf32> to vector<8x128xf32>
    %cst_121 = arith.constant 5.000000e-01 : f32
    %318 = vector.broadcast %cst_121 : f32 to vector<8x128xf32>
    %319 = arith.mulf %318, %317 : vector<8x128xf32>
    %320 = math.tanh %319 : vector<8x128xf32>
    %cst_122 = arith.constant 5.000000e-01 : f32
    %321 = vector.broadcast %cst_122 : f32 to vector<8x128xf32>
    %322 = arith.mulf %321, %320 : vector<8x128xf32>
    %cst_123 = arith.constant 5.000000e-01 : f32
    %323 = vector.broadcast %cst_123 : f32 to vector<8x128xf32>
    %324 = arith.addf %322, %323 : vector<8x128xf32>
    %325 = vector.extract_strided_slice %308 {offsets = [0, 256], sizes = [8, 128], strides = [1, 1]} : vector<8x512xf32> to vector<8x128xf32>
    %326 = math.tanh %325 : vector<8x128xf32>
    %327 = vector.extract_strided_slice %308 {offsets = [0, 384], sizes = [8, 128], strides = [1, 1]} : vector<8x512xf32> to vector<8x128xf32>
    %cst_124 = arith.constant 5.000000e-01 : f32
    %328 = vector.broadcast %cst_124 : f32 to vector<8x128xf32>
    %329 = arith.mulf %328, %327 : vector<8x128xf32>
    %330 = math.tanh %329 : vector<8x128xf32>
    %cst_125 = arith.constant 5.000000e-01 : f32
    %331 = vector.broadcast %cst_125 : f32 to vector<8x128xf32>
    %332 = arith.mulf %331, %330 : vector<8x128xf32>
    %cst_126 = arith.constant 5.000000e-01 : f32
    %333 = vector.broadcast %cst_126 : f32 to vector<8x128xf32>
    %334 = arith.addf %332, %333 : vector<8x128xf32>
    %335 = arith.mulf %316, %296 : vector<8x128xf32>
    %336 = arith.mulf %324, %326 : vector<8x128xf32>
    %337 = arith.addf %335, %336 : vector<8x128xf32>
    %338 = math.tanh %337 : vector<8x128xf32>
    %339 = arith.mulf %334, %338 : vector<8x128xf32>
    %340 = arith.index_cast %c7_i32 : i32 to index
    %c0_127 = arith.constant 0 : index
    %c0_128 = arith.constant 0 : index
    %341 = vector.load %arg6[%340, %c0_127, %c0_128] : memref<8x8x128xf32, #tpu.memory_space<vmem>>, vector<1x8x128xf32>
    %342 = vector.shape_cast %341 : vector<1x8x128xf32> to vector<8x128xf32>
    %343 = vector.shape_cast %339 : vector<8x128xf32> to vector<1x8x128xf32>
    tpu.vector_store %arg6[%340, %c0_127, %c0_128], %343 {strides = array<i32>} : memref<8x8x128xf32, #tpu.memory_space<vmem>>, vector<1x8x128xf32>,
    %c8_i32 = arith.constant 8 : i32
    %c0_129 = arith.constant 0 : index
    %c0_130 = arith.constant 0 : index
    %344 = vector.load %arg7[%c0_129, %c0_130] : memref<8x128xf32, #tpu.memory_space<vmem>>, vector<8x128xf32>
    tpu.vector_store %arg7[%c0_129, %c0_130], %339 {strides = array<i32>} : memref<8x128xf32, #tpu.memory_space<vmem>>, vector<8x128xf32>,
    %c0_131 = arith.constant 0 : index
    %c0_132 = arith.constant 0 : index
    %345 = vector.load %arg8[%c0_131, %c0_132] : memref<8x128xf32, #tpu.memory_space<vmem>>, vector<8x128xf32>
    tpu.vector_store %arg8[%c0_131, %c0_132], %337 {strides = array<i32>} : memref<8x128xf32, #tpu.memory_space<vmem>>, vector<8x128xf32>,
    return
  }
  func.func @transform_0(%arg0: i32, %arg1: i32) -> (i32, i32, i32) {
    %c0_i32 = arith.constant 0 : i32
    %c0_i32_0 = arith.constant 0 : i32
    return %arg1, %arg0, %c0_i32 : i32, i32, i32
  }
  func.func @transform_1(%arg0: i32, %arg1: i32) -> (i32, i32) {
    %c0_i32 = arith.constant 0 : i32
    %c0_i32_0 = arith.constant 0 : i32
    %c0_i32_1 = arith.constant 0 : i32
    return %c0_i32, %c0_i32_0 : i32, i32
  }
  func.func @transform_2(%arg0: i32, %arg1: i32) -> (i32, i32) {
    %c0_i32 = arith.constant 0 : i32
    %c0_i32_0 = arith.constant 0 : i32
    %c0_i32_1 = arith.constant 0 : i32
    return %c0_i32, %c0_i32_0 : i32, i32
  }
  func.func @transform_3(%arg0: i32, %arg1: i32) -> (i32, i32) {
    %c0_i32 = arith.constant 0 : i32
    %c0_i32_0 = arith.constant 0 : i32
    %c0_i32_1 = arith.constant 0 : i32
    return %c0_i32, %c0_i32_0 : i32, i32
  }
  func.func @transform_4(%arg0: i32, %arg1: i32) -> (i32, i32, i32) {
    %c0_i32 = arith.constant 0 : i32
    %c0_i32_0 = arith.constant 0 : i32
    return %arg1, %arg0, %c0_i32 : i32, i32, i32
  }
  func.func @transform_5(%arg0: i32, %arg1: i32) -> (i32, i32) {
    %c0_i32 = arith.constant 0 : i32
    %c0_i32_0 = arith.constant 0 : i32
    return %arg0, %c0_i32 : i32, i32
  }
  func.func @transform_6(%arg0: i32, %arg1: i32) -> (i32, i32) {
    %c0_i32 = arith.constant 0 : i32
    %c0_i32_0 = arith.constant 0 : i32
    return %arg0, %c0_i32 : i32, i32
  }
}

</mosaic_0001>

<bundles_post_ra>
// kernel: lstm_forward.1
= control target key start
LH: loop header
LB: loop body
LE: loop exit
PB: predicated region body
PF: predicated region fallthrough
CT: control target
= control target key end

     0   :  { %s2164_s21 = smov 0   ;;  %s2166_s22 = smov 0   ;;  %s2935_s0 = inlined_call_operand.vmem [shape: bf16[16,8,4], index: 0, kind: input, shape index: {}]   ;;  %s2936_s1 = inlined_call_operand.vmem [shape: bf16[4,512], index: 1, kind: input, shape index: {}]   ;;  %s2937_s2 = inlined_call_operand.vmem [shape: bf16[128,512], index: 2, kind: input, shape index: {}]   ;;  %s2938_s3 = inlined_call_operand.vmem [shape: f32[1,512], index: 3, kind: input, shape index: {}]   ;;  %s2939_s4 = inlined_call_operand.vmem [shape: f32[16,8,128], index: 4, kind: output, shape index: {0}]   ;;  %s2940_s5 = inlined_call_operand.vmem [shape: f32[8,128], index: 5, kind: output, shape index: {1}]   ;;  %s2941_s6 = inlined_call_operand.vmem [shape: f32[8,128], index: 6, kind: output, shape index: {2}]  }
   0x1   :  { %s2168_s23 = smov 0  }
   0x2 LB: > { %s26_s24 = sadd.s32 1, %s2120_s22  ;;  %p1847_p0 = scmp.ge.s32.totalorder %s2124_s23, 1  ;;  %s2124_s23 = sphi %s2168_s23, %s17_s23   ;;  %s2120_s22 = sphi %s2166_s22, %s2988_s22   ;;  %s2116_s21 = sphi %s2164_s21, %s2987_s21  }
   0x3   : > { %p27_p1 = scmp.ge.s32.totalorder %s26_s24, 2  ;;  %p237_p2 = scmp.lt.s32.totalorder %s2124_s23, 3 }
   0x5   : > { %s2990_s24 = smov (%p27_p1, %s26_s24), 0  ;;  %p238_p3 = pnand %p1847_p0, %p237_p2 }
   0x7   : > { %241 = sbr.rel (%p238_p3) target bundleno = 2077 (0x81d), region = 36 }
   0xe   : > { %s1848_s25 = sshll.u32 %s2116_s21, 3  ;;  %p1852_p5 = scmp.ne.s32.totalorder %s2116_s21, 0 }
   0xf   : > { %p282_p4 = scmp.lt.s32.totalorder %s1848_s25, 15  ;;  %v2126_v0 = vmov (!%p1852_p5), 0.0  }
  0x10   : > { %311 = sbr.rel (%p1852_p5) target bundleno = 23 (0x17), region = 40  ;;  %312 = vst [vmem:[%s2940_s5] sm:$0xff] (!%p1852_p5), %v2126_v0  ;;  %313 = vst [vmem:[%s2941_s6] sm:$0xff] (!%p1852_p5), %v2126_v0 }
  0x11   : > { %s2992_s25 = smov (!%p282_p4, %s1848_s25), 15 }
  0x12   : > { %s1849_s26 = sshll.u32 %s2992_s25, 2  ;;  %s1851_s27 = sshll.u32 %s2992_s25, 3 }
  0x13   : > { %s2185_s30 = scalar_lea.vmem %s2935_s0, %s1849_s26  ;;  %s2190_s9 = scalar_lea.vmem %s2939_s4, %s1851_s27 }
  0x17 PF: > { %v322_v1 = vld [vmem:[%s2936_s1] sm:$0xff]  ;;  %v348_v2 = vlaneseq  ;;  %v2127_v3 = vmov 1983009808   ;;  %v2942_v5 = vmov 0   ;;  %vm374_vm0 = vcmask 1041408   ;;  %v1951_v27 = vld [vmem:[%s2185_s30 + $0x8] sm:$0xff]  }
  0x18   : > { %v346_v4 = vunpack.c.l.s4 %v2127_v3  ;;  %419 = vmatprep.mubr.bf16.mxu0 %v2942_v5  ;;  %492 = vmatprep.mubr.bf16.mxu1 %v2942_v5  ;;  %v344_v8 = vcombine.high %v322_v1, %v322_v1  ;;  %v2209_v12 = vld [vmem:[%s2937_s2 + $0x4] ss:$16 sps:$4 sm:$0xff]   ;;  %v2214_v17 = vld [vmem:[%s2937_s2 + $0xc] ss:$16 sps:$4 sm:$0xff]   ;;  %v2220_v19 = vld [vmem:[%s2937_s2] ss:$16 sps:$4 sm:$0xff]  }
  0x19   : > { %v2203_v6 = vshrl.u32 %v348_v2, 7  ;;  %v1938_v18 = vld [vmem:[%s2185_s30] sm:$0xff]   ;;  %vm361_vm1 = vcmask 31744   ;;  %v2225_v20 = vld [vmem:[%s2937_s2 + $0x8] ss:$16 sps:$4 sm:$0xff]   ;;  %v1964_v36 = vld [vmem:[%s2185_s30 + $0x10] sm:$0xff]  }
  0x1a   : > { %v347_v7 = vunpack.c.0.s8 %v346_v4  ;;  %v2230_v21 = vld [vmem:[%s2937_s2 + $0x24] ss:$16 sps:$4 sm:$0xff]   ;;  %v2237_v22 = vld [vmem:[%s2937_s2 + $0x2c] ss:$16 sps:$4 sm:$0xff]   ;;  %v2246_v23 = vld [vmem:[%s2937_s2 + $0x20] ss:$16 sps:$4 sm:$0xff]  }
  0x1b   : > { %v2251_v24 = vld [vmem:[%s2937_s2 + $0x28] ss:$16 sps:$4 sm:$0xff]   ;;  %v2256_v25 = vld [vmem:[%s2937_s2 + $0x44] ss:$16 sps:$4 sm:$0xff]   ;;  %v2263_v26 = vld [vmem:[%s2937_s2 + $0x4c] ss:$16 sps:$4 sm:$0xff]  }
  0x1c   : > { %v350_v9 = vsub.s32 %v347_v7, %v2203_v6  ;;  %v2271_v28 = vld [vmem:[%s2937_s2 + $0x40] ss:$16 sps:$4 sm:$0xff]   ;;  %v2276_v29 = vld [vmem:[%s2937_s2 + $0x48] ss:$16 sps:$4 sm:$0xff]   ;;  %v2283_v30 = vld [vmem:[%s2937_s2 + $0x64] ss:$16 sps:$4 sm:$0xff]  }
  0x1d   : > { %v2290_v31 = vld [vmem:[%s2937_s2 + $0x6c] ss:$16 sps:$4 sm:$0xff]   ;;  %v2297_v32 = vld [vmem:[%s2937_s2 + $0x60] ss:$16 sps:$4 sm:$0xff]   ;;  %v2304_v33 = vld [vmem:[%s2937_s2 + $0x68] ss:$16 sps:$4 sm:$0xff]  }
  0x1e   : > { %v351_v10 = vrot.slane %v322_v1, %v350_v9  ;;  %v358_v11 = vrot.slane %v344_v8, %v350_v9  ;;  %v2311_v34 = vld [vmem:[%s2937_s2 + $0x84] ss:$16 sps:$4 sm:$0xff]   ;;  %v2316_v35 = vld [vmem:[%s2937_s2 + $0x8c] ss:$16 sps:$4 sm:$0xff]   ;;  %v2326_v37 = vld [vmem:[%s2937_s2 + $0x80] ss:$16 sps:$4 sm:$0xff]  }
  0x1f   : > { %v2331_v38 = vld [vmem:[%s2937_s2 + $0x88] ss:$16 sps:$4 sm:$0xff]   ;;  %v2338_v39 = vld [vmem:[%s2937_s2 + $0xa4] ss:$16 sps:$4 sm:$0xff]   ;;  %v2343_v40 = vld [vmem:[%s2937_s2 + $0xac] ss:$16 sps:$4 sm:$0xff]  }
  0x20   : > { %v359_v13 = vcombine.high %v351_v10, %v351_v10  ;;  %v360_v14 = vcombine.high %v358_v11, %v358_v11  ;;  %v376_v15 = vsel %vm374_vm0, %v351_v10, 0  ;;  %v382_v16 = vsel %vm374_vm0, %v358_v11, 0  ;;  %v2352_v41 = vld [vmem:[%s2937_s2 + $0xa0] ss:$16 sps:$4 sm:$0xff]   ;;  %v2357_v42 = vld [vmem:[%s2937_s2 + $0xa8] ss:$16 sps:$4 sm:$0xff]  }
  0x21   : > { %v2364_v43 = vld [vmem:[%s2937_s2 + $0xc4] ss:$16 sps:$4 sm:$0xff]   ;;  %v2369_v44 = vld [vmem:[%s2937_s2 + $0xcc] ss:$16 sps:$4 sm:$0xff]   ;;  %v2379_v46 = vld [vmem:[%s2937_s2 + $0xc0] ss:$16 sps:$4 sm:$0xff]  }
  0x22   : > { %1857 = vmatprep.subr.msk.bf16.mxu0 %vm374_vm0, %v359_v13  ;;  %1862 = vmatprep.subr.msk.bf16.mxu1 %vm374_vm0, %v360_v14  ;;  %v1977_v45 = vld [vmem:[%s2185_s30 + $0x18] sm:$0xff]   ;;  %v2391_v48 = vld [vmem:[%s2937_s2 + $0xe4] ss:$16 sps:$4 sm:$0xff]   ;;  %v2405_v50 = vld [vmem:[%s2937_s2 + $0xe0] ss:$16 sps:$4 sm:$0xff]   ;;  %v545_v54 = vsub.s32 2, %v2203_v6 }
  0x23   : > { %388 = vmatpush1.bf16.msra.mxu0 %v376_v15  ;;  %461 = vmatpush1.bf16.msra.mxu1 %v382_v16  ;;  %v2384_v47 = vld [vmem:[%s2937_s2 + $0xc8] ss:$16 sps:$4 sm:$0xff]   ;;  %v2396_v49 = vld [vmem:[%s2937_s2 + $0xec] ss:$16 sps:$4 sm:$0xff]   ;;  %v651_v52 = vld [vmem:[%s2940_s5] sm:$0xff]  ;;  %v549_v55 = vsub.s32 3, %v2203_v6 }
  0x24   : > { %818 = vmatprep.subr.bf16.mxu0 %v2209_v12  ;;  %859 = vmatprep.subr.bf16.mxu1 %v2214_v17  ;;  %v2410_v51 = vld [vmem:[%s2937_s2 + $0xe8] ss:$16 sps:$4 sm:$0xff]   ;;  %v657_v53 = vpack.c.bf16 %v651_v52, %v651_v52  ;;  %v537_v56 = vsub.s32 0, %v2203_v6  ;;  %v533_v57 = vld [vmem:[%s2938_s3] sm:$0xf]  ;;  %v541_v58 = vsub.s32 1, %v2203_v6 }
  0x25   : > { %v2464_v59 = vrot.slane %v533_v57, %v545_v54  ;;  %v2470_v62 = vrot.slane %v533_v57, %v549_v55 }
  0x26   : > { %1858 = vmatmul.mubr.msk.bf16.vlgmr.msra.gmra.mrb[0].mxu0 %vm361_vm1, %v1938_v18  ;;  %1863 = vmatmul.mubr.msk.bf16.vlgmr.msra.gmra.mrb[0].mxu1 %vm361_vm1, %v1938_v18  ;;  %v538_v63 = vrot.slane %v533_v57, %v537_v56  ;;  %v542_v2 = vrot.slane %v533_v57, %v541_v58 }
  0x27   : > { %819 = vmatpush1.bf16.msra.mxu0 %v2220_v19  ;;  %860 = vmatpush1.bf16.msra.mxu1 %v2225_v20 }
  0x28   : > { %820 = vmatprep.subr.bf16.mxu0 %v2230_v21  ;;  %861 = vmatprep.subr.bf16.mxu1 %v2237_v22 }
  0x29   : > { %429 = vmatprep.mubr.bf16.mxu0 %v2942_v5  ;;  %502 = vmatprep.mubr.bf16.mxu1 %v2942_v5 }
  0x2b   : > { %821 = vmatpush1.bf16.msra.mxu0 %v2246_v23  ;;  %862 = vmatpush1.bf16.msra.mxu1 %v2251_v24 }
  0x2c   : > { %822 = vmatprep.subr.bf16.mxu0 %v2256_v25  ;;  %863 = vmatprep.subr.bf16.mxu1 %v2263_v26 }
  0x2e   : > { %1859 = vmatmul.mubr.msk.bf16.gmra.mrb[4].mxu0 %vm361_vm1, %v1951_v27  ;;  %1864 = vmatmul.mubr.msk.bf16.gmra.mrb[4].mxu1 %vm361_vm1, %v1951_v27 }
  0x2f   : > { %823 = vmatpush1.bf16.msra.mxu0 %v2271_v28  ;;  %864 = vmatpush1.bf16.msra.mxu1 %v2276_v29 }
  0x30   : > { %824 = vmatprep.subr.bf16.mxu0 %v2283_v30  ;;  %865 = vmatprep.subr.bf16.mxu1 %v2290_v31 }
  0x31   : > { %439 = vmatprep.mubr.bf16.mxu0 %v2942_v5  ;;  %512 = vmatprep.mubr.bf16.mxu1 %v2942_v5 }
  0x33   : > { %825 = vmatpush1.bf16.msra.mxu0 %v2297_v32  ;;  %866 = vmatpush1.bf16.msra.mxu1 %v2304_v33 }
  0x34   : > { %826 = vmatprep.subr.bf16.mxu0 %v2311_v34  ;;  %867 = vmatprep.subr.bf16.mxu1 %v2316_v35 }
  0x36   : > { %1860 = vmatmul.mubr.msk.bf16.gmra.mrb[8].mxu0 %vm361_vm1, %v1964_v36  ;;  %1865 = vmatmul.mubr.msk.bf16.gmra.mrb[8].mxu1 %vm361_vm1, %v1964_v36 }
  0x37   : > { %827 = vmatpush1.bf16.msra.mxu0 %v2326_v37  ;;  %868 = vmatpush1.bf16.msra.mxu1 %v2331_v38 }
  0x38   : > { %828 = vmatprep.subr.bf16.mxu0 %v2338_v39  ;;  %869 = vmatprep.subr.bf16.mxu1 %v2343_v40 }
  0x39   : > { %449 = vmatprep.mubr.bf16.mxu0 %v2942_v5  ;;  %522 = vmatprep.mubr.bf16.mxu1 %v2942_v5 }
  0x3b   : > { %829 = vmatpush1.bf16.msra.mxu0 %v2352_v41  ;;  %870 = vmatpush1.bf16.msra.mxu1 %v2357_v42 }
  0x3c   : > { %830 = vmatprep.subr.bf16.mxu0 %v2364_v43  ;;  %871 = vmatprep.subr.bf16.mxu1 %v2369_v44 }
  0x3e   : > { %1861 = vmatmul.mubr.msk.bf16.gmra.mrb[12].mxu0 %vm361_vm1, %v1977_v45  ;;  %1866 = vmatmul.mubr.msk.bf16.gmra.mrb[12].mxu1 %vm361_vm1, %v1977_v45 }
  0x3f   : > { %831 = vmatpush1.bf16.msra.mxu0 %v2379_v46  ;;  %872 = vmatpush1.bf16.msra.mxu1 %v2384_v47 }
  0x40   : > { %832 = vmatprep.subr.bf16.mxu0 %v2391_v48  ;;  %873 = vmatprep.subr.bf16.mxu1 %v2396_v49 }
  0x41   : > { %850 = vmatprep.mubr.bf16.mxu0 %v2942_v5  ;;  %891 = vmatprep.mubr.bf16.mxu1 %v2942_v5 }
  0x43   : > { %833 = vmatpush1.bf16.msra.mxu0 %v2405_v50  ;;  %874 = vmatpush1.bf16.msra.mxu1 %v2410_v51 }
  0x44   : > { %929 = vmatprep.subr.bf16.mxu0 %v2209_v12  ;;  %970 = vmatprep.subr.bf16.mxu1 %v2214_v17 }
  0x46   : > { %851 = vmatmul.mubr.bf16.vlgmr.msra.gmra.mrb[16].mxu0 %v657_v53  ;;  %892 = vmatmul.mubr.bf16.vlgmr.msra.gmra.mrb[16].mxu1 %v657_v53 }
  0x47   : > { %930 = vmatpush1.bf16.msra.mxu0 %v2220_v19  ;;  %971 = vmatpush1.bf16.msra.mxu1 %v2225_v20 }
  0x48   : > { %931 = vmatprep.subr.bf16.mxu0 %v2230_v21  ;;  %972 = vmatprep.subr.bf16.mxu1 %v2237_v22 }
  0x49   : > { %961 = vmatprep.mubr.bf16.mxu0 %v2942_v5  ;;  %1002 = vmatprep.mubr.bf16.mxu1 %v2942_v5 }
  0x4b   : > { %932 = vmatpush1.bf16.msra.mxu0 %v2246_v23  ;;  %973 = vmatpush1.bf16.msra.mxu1 %v2251_v24 }
  0x4c   : > { %933 = vmatprep.subr.bf16.mxu0 %v2256_v25  ;;  %974 = vmatprep.subr.bf16.mxu1 %v2263_v26 }
  0x4f   : > { %934 = vmatpush1.bf16.msra.mxu0 %v2271_v28  ;;  %975 = vmatpush1.bf16.msra.mxu1 %v2276_v29 }
  0x50   : > { %935 = vmatprep.subr.bf16.mxu0 %v2283_v30  ;;  %976 = vmatprep.subr.bf16.mxu1 %v2290_v31 }
  0x53   : > { %936 = vmatpush1.bf16.msra.mxu0 %v2297_v32  ;;  %977 = vmatpush1.bf16.msra.mxu1 %v2304_v33 }
  0x54   : > { %937 = vmatprep.subr.bf16.mxu0 %v2311_v34  ;;  %978 = vmatprep.subr.bf16.mxu1 %v2316_v35 }
  0x57   : > { %938 = vmatpush1.bf16.msra.mxu0 %v2326_v37  ;;  %979 = vmatpush1.bf16.msra.mxu1 %v2331_v38 }
  0x58   : > { %939 = vmatprep.subr.bf16.mxu0 %v2338_v39  ;;  %980 = vmatprep.subr.bf16.mxu1 %v2343_v40 }
  0x5b   : > { %940 = vmatpush1.bf16.msra.mxu0 %v2352_v41  ;;  %981 = vmatpush1.bf16.msra.mxu1 %v2357_v42 }
  0x5c   : > { %941 = vmatprep.subr.bf16.mxu0 %v2364_v43  ;;  %982 = vmatprep.subr.bf16.mxu1 %v2369_v44 }
  0x5f   : > { %942 = vmatpush1.bf16.msra.mxu0 %v2379_v46  ;;  %983 = vmatpush1.bf16.msra.mxu1 %v2384_v47 }
  0x60   : > { %943 = vmatprep.subr.bf16.mxu0 %v2391_v48  ;;  %984 = vmatprep.subr.bf16.mxu1 %v2396_v49 }
  0x63   : > { %944 = vmatpush1.bf16.msra.mxu0 %v2405_v50  ;;  %985 = vmatpush1.bf16.msra.mxu1 %v2410_v51 }
  0x64   : > { %1041 = vmatprep.subr.bf16.mxu0 %v2209_v12  ;;  %1082 = vmatprep.subr.bf16.mxu1 %v2214_v17 }
  0xf9   : > { %v2466_v60 = vpop.f32.mrb[0].mxu0  ;;  %v2468_v61 = vpop.f32.mrb[0].mxu1 }
  0xfa   : > { %v423_v0 = vpop.f32.mrb[1].mxu0  ;;  %v496_v1 = vpop.f32.mrb[1].mxu1 }
  0xfb   : > { %v425_v3 = vpop.f32.mrb[2].mxu0  ;;  %v498_v4 = vpop.f32.mrb[2].mxu1 }
  0xfc   : > { %v2472_v7 = vadd.f32 %v538_v63, %v425_v3  ;;  %v427_v8 = vpop.f32.mrb[3].mxu0  ;;  %v2475_v9 = vadd.f32 %v2464_v59, %v498_v4  ;;  %v500_v6 = vpop.f32.mrb[3].mxu1 }
  0xfd   : > { %v2477_v10 = vadd.f32 %v542_v2, %v427_v8  ;;  %v2480_v11 = vadd.f32 %v2470_v62, %v500_v6 }
 0x101   : > { %v431_v13 = vpop.f32.mrb[4].mxu0  ;;  %v504_v14 = vpop.f32.mrb[4].mxu1 }
 0x102   : > { %v2482_v15 = vadd.f32 %v538_v63, %v431_v13  ;;  %v433_v16 = vpop.f32.mrb[5].mxu0  ;;  %v2485_v18 = vadd.f32 %v2464_v59, %v504_v14  ;;  %v506_v27 = vpop.f32.mrb[5].mxu1 }
 0x103   : > { %v2487_v36 = vadd.f32 %v542_v2, %v433_v16  ;;  %v435_v45 = vpop.f32.mrb[6].mxu0  ;;  %v2490_v52 = vadd.f32 %v2470_v62, %v506_v27  ;;  %v508_v53 = vpop.f32.mrb[6].mxu1 }
 0x104   : > { %v2492_v54 = vadd.f32 %v538_v63, %v435_v45  ;;  %v437_v55 = vpop.f32.mrb[7].mxu0  ;;  %v2495_v56 = vadd.f32 %v2464_v59, %v508_v53  ;;  %v510_v57 = vpop.f32.mrb[7].mxu1 }
 0x105   : > { %2944 = vst [vmem:[#allocation3_spill] sm:$0xff] %v2490_v52  ;;  %v2497_v58 = vadd.f32 %v542_v2, %v437_v55  ;;  %v2500_v3 = vadd.f32 %v2470_v62, %v510_v57 }
 0x106   : > { %2945 = vst [vmem:[#allocation4_spill] sm:$0xff] %v2492_v54  ;;  %2946 = vst [vmem:[#allocation5_spill] sm:$0xff] %v2495_v56 }
 0x107   : > { %2947 = vst [vmem:[#allocation6_spill] sm:$0xff] %v2497_v58  ;;  %2948 = vst [vmem:[#allocation7_spill] sm:$0xff] %v2500_v3 }
 0x109   : > { %v441_v4 = vpop.f32.mrb[8].mxu0  ;;  %v514_v8 = vpop.f32.mrb[8].mxu1 }
 0x10a   : > { %v2502_v6 = vadd.f32 %v538_v63, %v441_v4  ;;  %v443_v13 = vpop.f32.mrb[9].mxu0  ;;  %v2505_v14 = vadd.f32 %v2464_v59, %v514_v8  ;;  %v516_v16 = vpop.f32.mrb[9].mxu1 }
 0x10b   : > { %v2507_v27 = vadd.f32 %v542_v2, %v443_v13  ;;  %v445_v45 = vpop.f32.mrb[10].mxu0  ;;  %v2510_v53 = vadd.f32 %v2470_v62, %v516_v16  ;;  %v518_v55 = vpop.f32.mrb[10].mxu1 }
 0x10c   : > { %2949 = vst [vmem:[#allocation8_spill] sm:$0xff] %v2502_v6  ;;  %2950 = vst [vmem:[#allocation9_spill] sm:$0xff] %v2505_v14  ;;  %v2512_v5 = vadd.f32 %v538_v63, %v445_v45  ;;  %v447_v57 = vpop.f32.mrb[11].mxu0  ;;  %v2515_v3 = vadd.f32 %v2464_v59, %v518_v55  ;;  %v520_v4 = vpop.f32.mrb[11].mxu1 }
 0x10d   : > { %2951 = vst [vmem:[#allocation10_spill] sm:$0xff] %v2507_v27  ;;  %2952 = vst [vmem:[#allocation11_spill] sm:$0xff] %v2510_v53  ;;  %v2517_v6 = vadd.f32 %v542_v2, %v447_v57  ;;  %v2520_v8 = vadd.f32 %v2470_v62, %v520_v4 }
 0x10e   : > { %2953 = vst [vmem:[#allocation12_spill] sm:$0xff] %v2512_v5  ;;  %2954 = vst [vmem:[#allocation13_spill] sm:$0xff] %v2515_v3 }
 0x10f   : > { %2955 = vst [vmem:[#allocation14_spill] sm:$0xff] %v2517_v6  ;;  %2956 = vst [vmem:[#allocation15_spill] sm:$0xff] %v2520_v8 }
 0x111   : > { %v451_v14 = vpop.f32.mrb[12].mxu0  ;;  %v524_v13 = vpop.f32.mrb[12].mxu1 }
 0x112   : > { %v2522_v27 = vadd.f32 %v538_v63, %v451_v14  ;;  %v453_v58 = vpop.f32.mrb[13].mxu0  ;;  %v2525_v16 = vadd.f32 %v2464_v59, %v524_v13  ;;  %v526_v45 = vpop.f32.mrb[13].mxu1 }
 0x113   : > { %v2527_v5 = vadd.f32 %v542_v2, %v453_v58  ;;  %v455_v53 = vpop.f32.mrb[14].mxu0  ;;  %v2530_v55 = vadd.f32 %v2470_v62, %v526_v45  ;;  %v528_v57 = vpop.f32.mrb[14].mxu1  ;;  %v555_v58 = vadd.f32 %v538_v63, %v2466_v60  ;;  %v556_v45 = vadd.f32 %v542_v2, %v423_v0 }
 0x114   : > { %2957 = vst [vmem:[#allocation16_spill] sm:$0xff] %v2522_v27  ;;  %2958 = vst [vmem:[#allocation17_spill] sm:$0xff] %v2525_v16  ;;  %v2532_v6 = vadd.f32 %v538_v63, %v455_v53  ;;  %v457_v4 = vpop.f32.mrb[15].mxu0  ;;  %v2535_v8 = vadd.f32 %v2464_v59, %v528_v57  ;;  %v530_v14 = vpop.f32.mrb[15].mxu1 }
 0x115   : > { %2959 = vst [vmem:[#allocation18_spill] sm:$0xff] %v2527_v5  ;;  %2960 = vst [vmem:[#allocation19_spill] sm:$0xff] %v2530_v55  ;;  %v2537_v27 = vadd.f32 %v542_v2, %v457_v4  ;;  %v2540_v13 = vadd.f32 %v2470_v62, %v530_v14  ;;  %v557_v5 = vadd.f32 %v2464_v59, %v2468_v61 }
 0x116   : > { %2961 = vst [vmem:[#allocation20_spill] sm:$0xff] %v2532_v6  ;;  %2962 = vst [vmem:[#allocation21_spill] sm:$0xff] %v2535_v8  ;;  %v558_v55 = vadd.f32 %v2470_v62, %v496_v1 }
 0x117   : > { %2963 = vst [vmem:[#allocation22_spill] sm:$0xff] %v2537_v27  ;;  %2964 = vst [vmem:[#allocation23_spill] sm:$0xff] %v2540_v13 }
 0x119   : > { %v852_v53 = vpop.f32.mrb[16].mxu0  ;;  %v893_v6 = vpop.f32.mrb[16].mxu1 }
 0x11a   : > { %v900_v16 = vadd.f32 %v852_v53, %v555_v58  ;;  %v902_v3 = vadd.f32 %v893_v6, %v557_v5  ;;  %v854_v57 = vpop.f32.mrb[17].mxu0  ;;  %v895_v8 = vpop.f32.mrb[17].mxu1  ;;  %v652_v5 = vld [vmem:[%s2941_s6] sm:$0xff]  ;;  %v2965_v58 = vmov 0  }
 0x11b   : > { %v901_v56 = vadd.f32 %v854_v57, %v556_v45  ;;  %v903_v4 = vadd.f32 %v895_v8, %v558_v55  ;;  %v856_v27 = vpop.f32.mrb[18].mxu0  ;;  %v897_v54 = vpop.f32.mrb[18].mxu1 }
 0x11c   : > { %v904_v14 = vmul.f32 0.5, %v900_v16  ;;  %v857_v13 = vpop.f32.mrb[19].mxu0  ;;  %v898_v52 = vpop.f32.mrb[19].mxu1 }
 0x11d   : > { %v908_v60 = vmul.f32 0.5, %v901_v56  ;;  %v913_v59 = vmul.f32 0.5, %v903_v4 }
 0x11e   : > { %1990 = vtanh.f32 %v904_v14 }
 0x11f   : > { %1992 = vtanh.f32 %v908_v60 }
 0x120   : > { %1994 = vtanh.f32 %v902_v3 }
 0x121   : > { %1996 = vtanh.f32 %v913_v59 }
 0x128   : > { %v1991_v61 = vpop.eup %1990 }
 0x129   : > { %v1993_v62 = vpop.eup %1992  ;;  %v906_v63 = vmul.f32 0.5, %v1991_v61 }
 0x12a   : > { %v910_v0 = vmul.f32 0.5, %v1993_v62  ;;  %v1995_v54 = vpop.eup %1994 }
 0x12b   : > { %v907_v1 = vadd.f32 0.5, %v906_v63  ;;  %v1997_v3 = vpop.eup %1996 }
 0x12c   : > { %v911_v2 = vadd.f32 0.5, %v910_v0  ;;  %v915_v27 = vmul.f32 0.5, %v1997_v3 }
 0x12d   : > { %v917_v6 = vmul.f32 %v907_v1, %v652_v5 }
 0x12e   : > { %v918_v52 = vmul.f32 %v1995_v54, %v911_v2  ;;  %v916_v8 = vadd.f32 0.5, %v915_v27 }
 0x130   : > { %v2549_v56 = vadd.f32 %v918_v52, %v917_v6 }
 0x132   : > { %1998 = vtanh.f32 %v2549_v56 }
 0x13c   : > { %v1999_v16 = vpop.eup %1998 }
 0x13d   : > { %v921_v55 = vmul.f32 %v1999_v16, %v916_v8 }
 0x13f   : > { %922 = vst [vmem:[%s2190_s9] sm:$0xff] %v921_v55  ;;  %v928_v13 = vpack.c.bf16 %v921_v55, %v921_v55 }
 0x141   : > { %962 = vmatmul.mubr.bf16.vlgmr.msra.gmra.mrb[20].mxu0 %v928_v13  ;;  %1003 = vmatmul.mubr.bf16.vlgmr.msra.gmra.mrb[20].mxu1 %v928_v13 }
 0x142   : > { %1042 = vmatpush1.bf16.msra.mxu0 %v2220_v19  ;;  %1083 = vmatpush1.bf16.msra.mxu1 %v2225_v20 }
 0x143   : > { %1043 = vmatprep.subr.bf16.mxu0 %v2230_v21  ;;  %1084 = vmatprep.subr.bf16.mxu1 %v2237_v22 }
 0x144   : > { %1073 = vmatprep.mubr.bf16.mxu0 %v2965_v58  ;;  %1114 = vmatprep.mubr.bf16.mxu1 %v2965_v58 }
 0x146   : > { %1044 = vmatpush1.bf16.msra.mxu0 %v2246_v23  ;;  %1085 = vmatpush1.bf16.msra.mxu1 %v2251_v24 }
 0x147   : > { %1045 = vmatprep.subr.bf16.mxu0 %v2256_v25  ;;  %1086 = vmatprep.subr.bf16.mxu1 %v2263_v26 }
 0x14a   : > { %1046 = vmatpush1.bf16.msra.mxu0 %v2271_v28  ;;  %1087 = vmatpush1.bf16.msra.mxu1 %v2276_v29 }
 0x14b   : > { %1047 = vmatprep.subr.bf16.mxu0 %v2283_v30  ;;  %1088 = vmatprep.subr.bf16.mxu1 %v2290_v31 }
 0x14e   : > { %1048 = vmatpush1.bf16.msra.mxu0 %v2297_v32  ;;  %1089 = vmatpush1.bf16.msra.mxu1 %v2304_v33 }
 0x14f   : > { %1049 = vmatprep.subr.bf16.mxu0 %v2311_v34  ;;  %1090 = vmatprep.subr.bf16.mxu1 %v2316_v35 }
 0x152   : > { %1050 = vmatpush1.bf16.msra.mxu0 %v2326_v37  ;;  %1091 = vmatpush1.bf16.msra.mxu1 %v2331_v38 }
 0x153   : > { %1051 = vmatprep.subr.bf16.mxu0 %v2338_v39  ;;  %1092 = vmatprep.subr.bf16.mxu1 %v2343_v40 }
 0x156   : > { %1052 = vmatpush1.bf16.msra.mxu0 %v2352_v41  ;;  %1093 = vmatpush1.bf16.msra.mxu1 %v2357_v42 }
 0x157   : > { %1053 = vmatprep.subr.bf16.mxu0 %v2364_v43  ;;  %1094 = vmatprep.subr.bf16.mxu1 %v2369_v44 }
 0x15a   : > { %1054 = vmatpush1.bf16.msra.mxu0 %v2379_v46  ;;  %1095 = vmatpush1.bf16.msra.mxu1 %v2384_v47 }
 0x15b   : > { %1055 = vmatprep.subr.bf16.mxu0 %v2391_v48  ;;  %1096 = vmatprep.subr.bf16.mxu1 %v2396_v49 }
 0x15e   : > { %1056 = vmatpush1.bf16.msra.mxu0 %v2405_v50  ;;  %1097 = vmatpush1.bf16.msra.mxu1 %v2410_v51 }
 0x15f   : > { %1153 = vmatprep.subr.bf16.mxu0 %v2209_v12  ;;  %1194 = vmatprep.subr.bf16.mxu1 %v2214_v17 }
 0x214   : > { %v963_v45 = vpop.f32.mrb[20].mxu0  ;;  %v1004_v53 = vpop.f32.mrb[20].mxu1 }
 0x215   : > { %v1011_v57 = vadd.f32 %v963_v45, %v2472_v7  ;;  %v1013_v4 = vadd.f32 %v1004_v53, %v2475_v9  ;;  %v965_v14 = vpop.f32.mrb[21].mxu0  ;;  %v1006_v60 = vpop.f32.mrb[21].mxu1 }
 0x216   : > { %v1012_v59 = vadd.f32 %v965_v14, %v2477_v10  ;;  %v1014_v61 = vadd.f32 %v1006_v60, %v2480_v11  ;;  %v967_v62 = vpop.f32.mrb[22].mxu0  ;;  %v1008_v63 = vpop.f32.mrb[22].mxu1 }
 0x217   : > { %v1015_v5 = vmul.f32 0.5, %v1011_v57  ;;  %v968_v0 = vpop.f32.mrb[23].mxu0  ;;  %v1009_v1 = vpop.f32.mrb[23].mxu1 }
 0x218   : > { %v1019_v2 = vmul.f32 0.5, %v1012_v59  ;;  %v1024_v54 = vmul.f32 0.5, %v1014_v61 }
 0x219   : > { %2000 = vtanh.f32 %v1015_v5  ;;  %v2966_v5 = vld [vmem:[#allocation3_spill] sm:$0xff] }
 0x21a   : > { %2002 = vtanh.f32 %v1019_v2 }
 0x21b   : > { %2004 = vtanh.f32 %v1013_v4 }
 0x21c   : > { %2006 = vtanh.f32 %v1024_v54 }
 0x223   : > { %v2001_v6 = vpop.eup %2000 }
 0x224   : > { %v2003_v7 = vpop.eup %2002  ;;  %v1017_v9 = vmul.f32 0.5, %v2001_v6 }
 0x225   : > { %v1021_v52 = vmul.f32 0.5, %v2003_v7  ;;  %v2005_v27 = vpop.eup %2004 }
 0x226   : > { %v1018_v3 = vadd.f32 0.5, %v1017_v9  ;;  %v2007_v55 = vpop.eup %2006 }
 0x227   : > { %v1022_v10 = vadd.f32 0.5, %v1021_v52  ;;  %v1026_v13 = vmul.f32 0.5, %v2007_v55 }
 0x228   : > { %v1028_v11 = vmul.f32 %v1018_v3, %v2549_v56 }
 0x229   : > { %v1029_v8 = vmul.f32 %v2005_v27, %v1022_v10  ;;  %v1027_v45 = vadd.f32 0.5, %v1026_v13 }
 0x22b   : > { %v2592_v16 = vadd.f32 %v1029_v8, %v1028_v11 }
 0x22d   : > { %2008 = vtanh.f32 %v2592_v16 }
 0x237   : > { %v2009_v53 = vpop.eup %2008 }
 0x238   : > { %v1032_v57 = vmul.f32 %v2009_v53, %v1027_v45 }
 0x23a   : > { %1899 = vst [vmem:[%s2190_s9 + $0x8] sm:$0xff] %v1032_v57  ;;  %v1040_v4 = vpack.c.bf16 %v1032_v57, %v1032_v57 }
 0x23c   : > { %1074 = vmatmul.mubr.bf16.vlgmr.msra.gmra.mrb[24].mxu0 %v1040_v4  ;;  %1115 = vmatmul.mubr.bf16.vlgmr.msra.gmra.mrb[24].mxu1 %v1040_v4 }
 0x23d   : > { %1154 = vmatpush1.bf16.msra.mxu0 %v2220_v19  ;;  %1195 = vmatpush1.bf16.msra.mxu1 %v2225_v20 }
 0x23e   : > { %1155 = vmatprep.subr.bf16.mxu0 %v2230_v21  ;;  %1196 = vmatprep.subr.bf16.mxu1 %v2237_v22 }
 0x23f   : > { %1185 = vmatprep.mubr.bf16.mxu0 %v2965_v58  ;;  %1226 = vmatprep.mubr.bf16.mxu1 %v2965_v58 }
 0x241   : > { %1156 = vmatpush1.bf16.msra.mxu0 %v2246_v23  ;;  %1197 = vmatpush1.bf16.msra.mxu1 %v2251_v24 }
 0x242   : > { %1157 = vmatprep.subr.bf16.mxu0 %v2256_v25  ;;  %1198 = vmatprep.subr.bf16.mxu1 %v2263_v26 }
 0x245   : > { %1158 = vmatpush1.bf16.msra.mxu0 %v2271_v28  ;;  %1199 = vmatpush1.bf16.msra.mxu1 %v2276_v29 }
 0x246   : > { %1159 = vmatprep.subr.bf16.mxu0 %v2283_v30  ;;  %1200 = vmatprep.subr.bf16.mxu1 %v2290_v31 }
 0x249   : > { %1160 = vmatpush1.bf16.msra.mxu0 %v2297_v32  ;;  %1201 = vmatpush1.bf16.msra.mxu1 %v2304_v33 }
 0x24a   : > { %1161 = vmatprep.subr.bf16.mxu0 %v2311_v34  ;;  %1202 = vmatprep.subr.bf16.mxu1 %v2316_v35 }
 0x24d   : > { %1162 = vmatpush1.bf16.msra.mxu0 %v2326_v37  ;;  %1203 = vmatpush1.bf16.msra.mxu1 %v2331_v38 }
 0x24e   : > { %1163 = vmatprep.subr.bf16.mxu0 %v2338_v39  ;;  %1204 = vmatprep.subr.bf16.mxu1 %v2343_v40 }
 0x251   : > { %1164 = vmatpush1.bf16.msra.mxu0 %v2352_v41  ;;  %1205 = vmatpush1.bf16.msra.mxu1 %v2357_v42 }
 0x252   : > { %1165 = vmatprep.subr.bf16.mxu0 %v2364_v43  ;;  %1206 = vmatprep.subr.bf16.mxu1 %v2369_v44 }
 0x255   : > { %1166 = vmatpush1.bf16.msra.mxu0 %v2379_v46  ;;  %1207 = vmatpush1.bf16.msra.mxu1 %v2384_v47 }
 0x256   : > { %1167 = vmatprep.subr.bf16.mxu0 %v2391_v48  ;;  %1208 = vmatprep.subr.bf16.mxu1 %v2396_v49 }
 0x259   : > { %1168 = vmatpush1.bf16.msra.mxu0 %v2405_v50  ;;  %1209 = vmatpush1.bf16.msra.mxu1 %v2410_v51 }
 0x25a   : > { %1265 = vmatprep.subr.bf16.mxu0 %v2209_v12  ;;  %1306 = vmatprep.subr.bf16.mxu1 %v2214_v17 }
 0x30f   : > { %v1075_v56 = vpop.f32.mrb[24].mxu0  ;;  %v1116_v14 = vpop.f32.mrb[24].mxu1 }
 0x310   : > { %v1123_v60 = vadd.f32 %v1075_v56, %v2482_v15  ;;  %v1125_v59 = vadd.f32 %v1116_v14, %v2485_v18  ;;  %v1077_v61 = vpop.f32.mrb[25].mxu0  ;;  %v1118_v62 = vpop.f32.mrb[25].mxu1 }
 0x311   : > { %v1124_v63 = vadd.f32 %v1077_v61, %v2487_v36  ;;  %v1126_v0 = vadd.f32 %v1118_v62, %v2966_v5  ;;  %v1079_v1 = vpop.f32.mrb[26].mxu0  ;;  %v1120_v2 = vpop.f32.mrb[26].mxu1  ;;  %v2968_v62 = vld [vmem:[#allocation5_spill] sm:$0xff] }
 0x312   : > { %v1127_v54 = vmul.f32 0.5, %v1123_v60  ;;  %v1080_v6 = vpop.f32.mrb[27].mxu0  ;;  %v1121_v7 = vpop.f32.mrb[27].mxu1  ;;  %v2969_v1 = vld [vmem:[#allocation6_spill] sm:$0xff] }
 0x313   : > { %v1131_v9 = vmul.f32 0.5, %v1124_v63  ;;  %v1136_v52 = vmul.f32 0.5, %v1126_v0 }
 0x314   : > { %2010 = vtanh.f32 %v1127_v54  ;;  %v2970_v54 = vld [vmem:[#allocation7_spill] sm:$0xff] }
 0x315   : > { %2012 = vtanh.f32 %v1131_v9 }
 0x316   : > { %2014 = vtanh.f32 %v1125_v59  ;;  %v2967_v59 = vld [vmem:[#allocation4_spill] sm:$0xff] }
 0x317   : > { %2016 = vtanh.f32 %v1136_v52 }
 0x31e   : > { %v2011_v3 = vpop.eup %2010 }
 0x31f   : > { %v2013_v15 = vpop.eup %2012  ;;  %v1129_v18 = vmul.f32 0.5, %v2011_v3 }
 0x320   : > { %v1133_v10 = vmul.f32 0.5, %v2013_v15  ;;  %v2015_v11 = vpop.eup %2014 }
 0x321   : > { %v1130_v27 = vadd.f32 0.5, %v1129_v18  ;;  %v2017_v45 = vpop.eup %2016 }
 0x322   : > { %v1134_v36 = vadd.f32 0.5, %v1133_v10  ;;  %v1138_v53 = vmul.f32 0.5, %v2017_v45 }
 0x323   : > { %v1140_v8 = vmul.f32 %v1130_v27, %v2592_v16 }
 0x324   : > { %v1141_v55 = vmul.f32 %v2015_v11, %v1134_v36  ;;  %v1139_v57 = vadd.f32 0.5, %v1138_v53 }
 0x326   : > { %v2635_v13 = vadd.f32 %v1141_v55, %v1140_v8 }
 0x328   : > { %2018 = vtanh.f32 %v2635_v13 }
 0x332   : > { %v2019_v4 = vpop.eup %2018 }
 0x333   : > { %v1144_v56 = vmul.f32 %v2019_v4, %v1139_v57 }
 0x335   : > { %1900 = vst [vmem:[%s2190_s9 + $0x10] sm:$0xff] %v1144_v56  ;;  %v1152_v14 = vpack.c.bf16 %v1144_v56, %v1144_v56 }
 0x337   : > { %1186 = vmatmul.mubr.bf16.vlgmr.msra.gmra.mrb[28].mxu0 %v1152_v14  ;;  %1227 = vmatmul.mubr.bf16.vlgmr.msra.gmra.mrb[28].mxu1 %v1152_v14 }
 0x338   : > { %1266 = vmatpush1.bf16.msra.mxu0 %v2220_v19  ;;  %1307 = vmatpush1.bf16.msra.mxu1 %v2225_v20 }
 0x339   : > { %1267 = vmatprep.subr.bf16.mxu0 %v2230_v21  ;;  %1308 = vmatprep.subr.bf16.mxu1 %v2237_v22 }
 0x33a   : > { %1297 = vmatprep.mubr.bf16.mxu0 %v2965_v58  ;;  %1338 = vmatprep.mubr.bf16.mxu1 %v2965_v58 }
 0x33c   : > { %1268 = vmatpush1.bf16.msra.mxu0 %v2246_v23  ;;  %1309 = vmatpush1.bf16.msra.mxu1 %v2251_v24 }
 0x33d   : > { %1269 = vmatprep.subr.bf16.mxu0 %v2256_v25  ;;  %1310 = vmatprep.subr.bf16.mxu1 %v2263_v26 }
 0x340   : > { %1270 = vmatpush1.bf16.msra.mxu0 %v2271_v28  ;;  %1311 = vmatpush1.bf16.msra.mxu1 %v2276_v29 }
 0x341   : > { %1271 = vmatprep.subr.bf16.mxu0 %v2283_v30  ;;  %1312 = vmatprep.subr.bf16.mxu1 %v2290_v31 }
 0x344   : > { %1272 = vmatpush1.bf16.msra.mxu0 %v2297_v32  ;;  %1313 = vmatpush1.bf16.msra.mxu1 %v2304_v33 }
 0x345   : > { %1273 = vmatprep.subr.bf16.mxu0 %v2311_v34  ;;  %1314 = vmatprep.subr.bf16.mxu1 %v2316_v35 }
 0x348   : > { %1274 = vmatpush1.bf16.msra.mxu0 %v2326_v37  ;;  %1315 = vmatpush1.bf16.msra.mxu1 %v2331_v38 }
 0x349   : > { %1275 = vmatprep.subr.bf16.mxu0 %v2338_v39  ;;  %1316 = vmatprep.subr.bf16.mxu1 %v2343_v40 }
 0x34c   : > { %1276 = vmatpush1.bf16.msra.mxu0 %v2352_v41  ;;  %1317 = vmatpush1.bf16.msra.mxu1 %v2357_v42 }
 0x34d   : > { %1277 = vmatprep.subr.bf16.mxu0 %v2364_v43  ;;  %1318 = vmatprep.subr.bf16.mxu1 %v2369_v44 }
 0x350   : > { %1278 = vmatpush1.bf16.msra.mxu0 %v2379_v46  ;;  %1319 = vmatpush1.bf16.msra.mxu1 %v2384_v47 }
 0x351   : > { %1279 = vmatprep.subr.bf16.mxu0 %v2391_v48  ;;  %1320 = vmatprep.subr.bf16.mxu1 %v2396_v49 }
 0x354   : > { %1280 = vmatpush1.bf16.msra.mxu0 %v2405_v50  ;;  %1321 = vmatpush1.bf16.msra.mxu1 %v2410_v51 }
 0x355   : > { %1377 = vmatprep.subr.bf16.mxu0 %v2209_v12  ;;  %1418 = vmatprep.subr.bf16.mxu1 %v2214_v17 }
 0x40a   : > { %v1187_v16 = vpop.f32.mrb[28].mxu0  ;;  %v1228_v60 = vpop.f32.mrb[28].mxu1 }
 0x40b   : > { %v1235_v61 = vadd.f32 %v1187_v16, %v2967_v59  ;;  %v1237_v63 = vadd.f32 %v1228_v60, %v2968_v62  ;;  %v1189_v5 = vpop.f32.mrb[29].mxu0  ;;  %v1230_v0 = vpop.f32.mrb[29].mxu1 }
 0x40c   : > { %v1236_v2 = vadd.f32 %v1189_v5, %v2969_v1  ;;  %v1238_v6 = vadd.f32 %v1230_v0, %v2970_v54  ;;  %v1191_v7 = vpop.f32.mrb[30].mxu0  ;;  %v1232_v9 = vpop.f32.mrb[30].mxu1 }
 0x40d   : > { %v1239_v52 = vmul.f32 0.5, %v1235_v61  ;;  %v1192_v3 = vpop.f32.mrb[31].mxu0  ;;  %v1233_v15 = vpop.f32.mrb[31].mxu1 }
 0x40e   : > { %v1243_v12 = vmul.f32 0.5, %v1236_v2  ;;  %v1248_v17 = vmul.f32 0.5, %v1238_v6 }
 0x40f   : > { %2020 = vtanh.f32 %v1239_v52 }
 0x410   : > { %2022 = vtanh.f32 %v1243_v12 }
 0x411   : > { %2024 = vtanh.f32 %v1237_v63 }
 0x412   : > { %2026 = vtanh.f32 %v1248_v17 }
 0x419   : > { %v2021_v18 = vpop.eup %2020 }
 0x41a   : > { %v2023_v10 = vpop.eup %2022  ;;  %v1241_v27 = vmul.f32 0.5, %v2021_v18 }
 0x41b   : > { %v1245_v36 = vmul.f32 0.5, %v2023_v10  ;;  %v2025_v55 = vpop.eup %2024 }
 0x41c   : > { %v1242_v11 = vadd.f32 0.5, %v1241_v27  ;;  %v2027_v4 = vpop.eup %2026 }
 0x41d   : > { %v1246_v8 = vadd.f32 0.5, %v1245_v36  ;;  %v1250_v56 = vmul.f32 0.5, %v2027_v4  ;;  %v2756_v4 = vld [vmem:[%s2937_s2 + $0x2c] ss:$16 sps:$4 sm:$0xff]  }
 0x41e   : > { %v1252_v45 = vmul.f32 %v1242_v11, %v2635_v13 }
 0x41f   : > { %v1253_v53 = vmul.f32 %v2025_v55, %v1246_v8  ;;  %v1251_v14 = vadd.f32 0.5, %v1250_v56  ;;  %v2764_v56 = vld [vmem:[%s2937_s2 + $0x20] ss:$16 sps:$4 sm:$0xff]  }
 0x421   : > { %v2678_v57 = vadd.f32 %v1253_v53, %v1252_v45  ;;  %v2738_v45 = vld [vmem:[%s2937_s2] ss:$16 sps:$4 sm:$0xff]   ;;  %v2744_v53 = vld [vmem:[%s2937_s2 + $0x8] ss:$16 sps:$4 sm:$0xff]  }
 0x423   : > { %2028 = vtanh.f32 %v2678_v57 }
 0x42d   : > { %v2029_v16 = vpop.eup %2028 }
 0x42e   : > { %v1256_v60 = vmul.f32 %v2029_v16, %v1251_v14  ;;  %v2770_v14 = vld [vmem:[%s2937_s2 + $0x28] ss:$16 sps:$4 sm:$0xff]   ;;  %v2776_v16 = vld [vmem:[%s2937_s2 + $0x44] ss:$16 sps:$4 sm:$0xff]  }
 0x430   : > { %1901 = vst [vmem:[%s2190_s9 + $0x18] sm:$0xff] %v1256_v60  ;;  %v1264_v59 = vpack.c.bf16 %v1256_v60, %v1256_v60  ;;  %v2782_v60 = vld [vmem:[%s2937_s2 + $0x4c] ss:$16 sps:$4 sm:$0xff]  }
 0x432   : > { %1298 = vmatmul.mubr.bf16.vlgmr.msra.gmra.mrb[32].mxu0 %v1264_v59  ;;  %1339 = vmatmul.mubr.bf16.vlgmr.msra.gmra.mrb[32].mxu1 %v1264_v59  ;;  %v2788_v59 = vld [vmem:[%s2937_s2 + $0x40] ss:$16 sps:$4 sm:$0xff]  }
 0x433   : > { %1378 = vmatpush1.bf16.msra.mxu0 %v2220_v19  ;;  %1419 = vmatpush1.bf16.msra.mxu1 %v2225_v20  ;;  %v2717_v19 = vld [vmem:[%s2937_s2 + $0x4] ss:$16 sps:$4 sm:$0xff]   ;;  %v2723_v20 = vld [vmem:[%s2937_s2 + $0xc] ss:$16 sps:$4 sm:$0xff]  }
 0x434   : > { %1379 = vmatprep.subr.bf16.mxu0 %v2230_v21  ;;  %1420 = vmatprep.subr.bf16.mxu1 %v2237_v22 }
 0x435   : > { %1409 = vmatprep.mubr.bf16.mxu0 %v2965_v58  ;;  %1450 = vmatprep.mubr.bf16.mxu1 %v2965_v58 }
 0x437   : > { %1380 = vmatpush1.bf16.msra.mxu0 %v2246_v23  ;;  %1421 = vmatpush1.bf16.msra.mxu1 %v2251_v24  ;;  %v2971_v23 = vld [vmem:[#allocation8_spill] sm:$0xff] }
 0x438   : > { %1381 = vmatprep.subr.bf16.mxu0 %v2256_v25  ;;  %1422 = vmatprep.subr.bf16.mxu1 %v2263_v26  ;;  %v2972_v25 = vld [vmem:[#allocation9_spill] sm:$0xff] }
 0x43b   : > { %1382 = vmatpush1.bf16.msra.mxu0 %v2271_v28  ;;  %1423 = vmatpush1.bf16.msra.mxu1 %v2276_v29 }
 0x43c   : > { %1383 = vmatprep.subr.bf16.mxu0 %v2283_v30  ;;  %1424 = vmatprep.subr.bf16.mxu1 %v2290_v31  ;;  %v2973_v30 = vld [vmem:[#allocation10_spill] sm:$0xff] }
 0x43f   : > { %1384 = vmatpush1.bf16.msra.mxu0 %v2297_v32  ;;  %1425 = vmatpush1.bf16.msra.mxu1 %v2304_v33  ;;  %v2974_v32 = vld [vmem:[#allocation11_spill] sm:$0xff] }
 0x440   : > { %1385 = vmatprep.subr.bf16.mxu0 %v2311_v34  ;;  %1426 = vmatprep.subr.bf16.mxu1 %v2316_v35 }
 0x443   : > { %1386 = vmatpush1.bf16.msra.mxu0 %v2326_v37  ;;  %1427 = vmatpush1.bf16.msra.mxu1 %v2331_v38 }
 0x444   : > { %1387 = vmatprep.subr.bf16.mxu0 %v2338_v39  ;;  %1428 = vmatprep.subr.bf16.mxu1 %v2343_v40 }
 0x447   : > { %1388 = vmatpush1.bf16.msra.mxu0 %v2352_v41  ;;  %1429 = vmatpush1.bf16.msra.mxu1 %v2357_v42 }
 0x448   : > { %1389 = vmatprep.subr.bf16.mxu0 %v2364_v43  ;;  %1430 = vmatprep.subr.bf16.mxu1 %v2369_v44 }
 0x44b   : > { %1390 = vmatpush1.bf16.msra.mxu0 %v2379_v46  ;;  %1431 = vmatpush1.bf16.msra.mxu1 %v2384_v47 }
 0x44c   : > { %1391 = vmatprep.subr.bf16.mxu0 %v2391_v48  ;;  %1432 = vmatprep.subr.bf16.mxu1 %v2396_v49 }
 0x44f   : > { %1392 = vmatpush1.bf16.msra.mxu0 %v2405_v50  ;;  %1433 = vmatpush1.bf16.msra.mxu1 %v2410_v51 }
 0x450   : > { %1489 = vmatprep.subr.bf16.mxu0 %v2717_v19  ;;  %1530 = vmatprep.subr.bf16.mxu1 %v2723_v20 }
 0x505   : > { %v1299_v21 = vpop.f32.mrb[32].mxu0  ;;  %v1340_v22 = vpop.f32.mrb[32].mxu1 }
 0x506   : > { %v1347_v24 = vadd.f32 %v1299_v21, %v2971_v23  ;;  %v1349_v26 = vadd.f32 %v1340_v22, %v2972_v25  ;;  %v1301_v28 = vpop.f32.mrb[33].mxu0  ;;  %v1342_v29 = vpop.f32.mrb[33].mxu1  ;;  %v2794_v21 = vld [vmem:[%s2937_s2 + $0x48] ss:$16 sps:$4 sm:$0xff]   ;;  %v2800_v22 = vld [vmem:[%s2937_s2 + $0x64] ss:$16 sps:$4 sm:$0xff]  }
 0x507   : > { %v1348_v31 = vadd.f32 %v1301_v28, %v2973_v30  ;;  %v1350_v13 = vadd.f32 %v1342_v29, %v2974_v32  ;;  %v1303_v61 = vpop.f32.mrb[34].mxu0  ;;  %v1344_v62 = vpop.f32.mrb[34].mxu1  ;;  %v2806_v23 = vld [vmem:[%s2937_s2 + $0x6c] ss:$16 sps:$4 sm:$0xff]  }
 0x508   : > { %v1351_v63 = vmul.f32 0.5, %v1347_v24  ;;  %v1304_v5 = vpop.f32.mrb[35].mxu0  ;;  %v1345_v0 = vpop.f32.mrb[35].mxu1  ;;  %v2812_v24 = vld [vmem:[%s2937_s2 + $0x60] ss:$16 sps:$4 sm:$0xff]  }
 0x509   : > { %v1355_v1 = vmul.f32 0.5, %v1348_v31  ;;  %v1360_v2 = vmul.f32 0.5, %v1350_v13 }
 0x50a   : > { %2030 = vtanh.f32 %v1351_v63 }
 0x50b   : > { %2032 = vtanh.f32 %v1355_v1 }
 0x50c   : > { %2034 = vtanh.f32 %v1349_v26 }
 0x50d   : > { %2036 = vtanh.f32 %v1360_v2 }
 0x514   : > { %v2031_v54 = vpop.eup %2030 }
 0x515   : > { %v2033_v6 = vpop.eup %2032  ;;  %v1353_v7 = vmul.f32 0.5, %v2031_v54 }
 0x516   : > { %v1357_v9 = vmul.f32 0.5, %v2033_v6  ;;  %v2035_v15 = vpop.eup %2034  ;;  %v2086_v6 = vld [vmem:[%s2937_s2 + $0x84] ss:$16 sps:$4 sm:$0xff]  }
 0x517   : > { %v1354_v52 = vadd.f32 0.5, %v1353_v7  ;;  %v2037_v10 = vpop.eup %2036  ;;  %v2087_v7 = vld [vmem:[%s2937_s2 + $0x8c] ss:$16 sps:$4 sm:$0xff]  }
 0x518   : > { %v1358_v3 = vadd.f32 0.5, %v1357_v9  ;;  %v1362_v27 = vmul.f32 0.5, %v2037_v10  ;;  %v2088_v9 = vld [vmem:[%s2937_s2 + $0x80] ss:$16 sps:$4 sm:$0xff]   ;;  %v2095_v10 = vld [vmem:[%s2937_s2 + $0xcc] ss:$16 sps:$4 sm:$0xff]  }
 0x519   : > { %v1364_v12 = vmul.f32 %v1354_v52, %v2678_v57  ;;  %v2750_v57 = vld [vmem:[%s2937_s2 + $0x24] ss:$16 sps:$4 sm:$0xff]   ;;  %v2089_v52 = vld [vmem:[%s2937_s2 + $0x88] ss:$16 sps:$4 sm:$0xff]  }
 0x51a   : > { %v1365_v17 = vmul.f32 %v2035_v15, %v1358_v3  ;;  %v1363_v36 = vadd.f32 0.5, %v1362_v27  ;;  %v2090_v3 = vld [vmem:[%s2937_s2 + $0xa4] ss:$16 sps:$4 sm:$0xff]   ;;  %v2091_v15 = vld [vmem:[%s2937_s2 + $0xac] ss:$16 sps:$4 sm:$0xff]  }
 0x51b   : > { %v2096_v27 = vld [vmem:[%s2937_s2 + $0xc0] ss:$16 sps:$4 sm:$0xff]  }
 0x51c   : > { %v2731_v18 = vadd.f32 %v1365_v17, %v1364_v12  ;;  %v2092_v12 = vld [vmem:[%s2937_s2 + $0xa0] ss:$16 sps:$4 sm:$0xff]   ;;  %v2093_v17 = vld [vmem:[%s2937_s2 + $0xa8] ss:$16 sps:$4 sm:$0xff]  }
 0x51e   : > { %2038 = vtanh.f32 %v2731_v18 }
 0x528   : > { %v2039_v11 = vpop.eup %2038 }
 0x529   : > { %v1368_v8 = vmul.f32 %v2039_v11, %v1363_v36  ;;  %v2097_v36 = vld [vmem:[%s2937_s2 + $0xc8] ss:$16 sps:$4 sm:$0xff]   ;;  %v2098_v11 = vld [vmem:[%s2937_s2 + $0xe4] ss:$16 sps:$4 sm:$0xff]  }
 0x52b   : > { %1902 = vst [vmem:[%s2190_s9 + $0x20] sm:$0xff] %v1368_v8  ;;  %v1376_v55 = vpack.c.bf16 %v1368_v8, %v1368_v8  ;;  %v2099_v8 = vld [vmem:[%s2937_s2 + $0xec] ss:$16 sps:$4 sm:$0xff]  }
 0x52d   : > { %1410 = vmatmul.mubr.bf16.vlgmr.msra.gmra.mrb[36].mxu0 %v1376_v55  ;;  %1451 = vmatmul.mubr.bf16.vlgmr.msra.gmra.mrb[36].mxu1 %v1376_v55  ;;  %v2100_v55 = vld [vmem:[%s2937_s2 + $0xe0] ss:$16 sps:$4 sm:$0xff]  }
 0x52e   : > { %1490 = vmatpush1.bf16.msra.mxu0 %v2738_v45  ;;  %1531 = vmatpush1.bf16.msra.mxu1 %v2744_v53 }
 0x52f   : > { %1491 = vmatprep.subr.bf16.mxu0 %v2750_v57  ;;  %1532 = vmatprep.subr.bf16.mxu1 %v2756_v4 }
 0x530   : > { %1521 = vmatprep.mubr.bf16.mxu0 %v2965_v58  ;;  %1562 = vmatprep.mubr.bf16.mxu1 %v2965_v58 }
 0x532   : > { %1492 = vmatpush1.bf16.msra.mxu0 %v2764_v56  ;;  %1533 = vmatpush1.bf16.msra.mxu1 %v2770_v14 }
 0x533   : > { %1493 = vmatprep.subr.bf16.mxu0 %v2776_v16  ;;  %1534 = vmatprep.subr.bf16.mxu1 %v2782_v60 }
 0x536   : > { %1494 = vmatpush1.bf16.msra.mxu0 %v2788_v59  ;;  %1535 = vmatpush1.bf16.msra.mxu1 %v2794_v21 }
 0x537   : > { %1495 = vmatprep.subr.bf16.mxu0 %v2800_v22  ;;  %1536 = vmatprep.subr.bf16.mxu1 %v2806_v23 }
 0x53a   : > { %1496 = vmatpush1.bf16.msra.mxu0 %v2812_v24  ;;  %1537 = vmatpush1.bf16.msra.mxu1 %v2304_v33 }
 0x53b   : > { %1497 = vmatprep.subr.bf16.mxu0 %v2311_v34  ;;  %1538 = vmatprep.subr.bf16.mxu1 %v2316_v35  ;;  %v2975_v35 = vld [vmem:[#allocation12_spill] sm:$0xff] }
 0x53e   : > { %1498 = vmatpush1.bf16.msra.mxu0 %v2326_v37  ;;  %1539 = vmatpush1.bf16.msra.mxu1 %v2331_v38  ;;  %v2976_v38 = vld [vmem:[#allocation13_spill] sm:$0xff] }
 0x53f   : > { %1499 = vmatprep.subr.bf16.mxu0 %v2338_v39  ;;  %1540 = vmatprep.subr.bf16.mxu1 %v2343_v40 }
 0x542   : > { %1500 = vmatpush1.bf16.msra.mxu0 %v2352_v41  ;;  %1541 = vmatpush1.bf16.msra.mxu1 %v2357_v42  ;;  %v2977_v42 = vld [vmem:[#allocation14_spill] sm:$0xff] }
 0x543   : > { %1501 = vmatprep.subr.bf16.mxu0 %v2364_v43  ;;  %1542 = vmatprep.subr.bf16.mxu1 %v2369_v44  ;;  %v2978_v44 = vld [vmem:[#allocation15_spill] sm:$0xff] }
 0x546   : > { %1502 = vmatpush1.bf16.msra.mxu0 %v2379_v46  ;;  %1543 = vmatpush1.bf16.msra.mxu1 %v2384_v47 }
 0x547   : > { %1503 = vmatprep.subr.bf16.mxu0 %v2391_v48  ;;  %1544 = vmatprep.subr.bf16.mxu1 %v2396_v49 }
 0x54a   : > { %1504 = vmatpush1.bf16.msra.mxu0 %v2405_v50  ;;  %1545 = vmatpush1.bf16.msra.mxu1 %v2410_v51 }
 0x54b   : > { %1601 = vmatprep.subr.bf16.mxu0 %v2717_v19  ;;  %1642 = vmatprep.subr.bf16.mxu1 %v2723_v20 }
 0x600   : > { %v1411_v33 = vpop.f32.mrb[36].mxu0  ;;  %v1452_v34 = vpop.f32.mrb[36].mxu1 }
 0x601   : > { %v1459_v37 = vadd.f32 %v1411_v33, %v2975_v35  ;;  %v1461_v39 = vadd.f32 %v1452_v34, %v2976_v38  ;;  %v1413_v40 = vpop.f32.mrb[37].mxu0  ;;  %v1454_v41 = vpop.f32.mrb[37].mxu1 }
 0x602   : > { %v1460_v43 = vadd.f32 %v1413_v40, %v2977_v42  ;;  %v1462_v46 = vadd.f32 %v1454_v41, %v2978_v44  ;;  %v1415_v47 = vpop.f32.mrb[38].mxu0  ;;  %v1456_v48 = vpop.f32.mrb[38].mxu1 }
 0x603   : > { %v1463_v49 = vmul.f32 0.5, %v1459_v37  ;;  %v1416_v50 = vpop.f32.mrb[39].mxu0  ;;  %v1457_v51 = vpop.f32.mrb[39].mxu1 }
 0x604   : > { %v1467_v19 = vmul.f32 0.5, %v1460_v43  ;;  %v1472_v20 = vmul.f32 0.5, %v1462_v46 }
 0x605   : > { %2040 = vtanh.f32 %v1463_v49 }
 0x606   : > { %2042 = vtanh.f32 %v1467_v19 }
 0x607   : > { %2044 = vtanh.f32 %v1461_v39 }
 0x608   : > { %2046 = vtanh.f32 %v1472_v20 }
 0x60f   : > { %v2041_v25 = vpop.eup %2040 }
 0x610   : > { %v2043_v26 = vpop.eup %2042  ;;  %v1465_v28 = vmul.f32 0.5, %v2041_v25 }
 0x611   : > { %v1469_v29 = vmul.f32 0.5, %v2043_v26  ;;  %v2045_v32 = vpop.eup %2044 }
 0x612   : > { %v1466_v30 = vadd.f32 0.5, %v1465_v28  ;;  %v2047_v63 = vpop.eup %2046 }
 0x613   : > { %v1470_v31 = vadd.f32 0.5, %v1469_v29  ;;  %v1474_v5 = vmul.f32 0.5, %v2047_v63 }
 0x614   : > { %v1476_v13 = vmul.f32 %v1466_v30, %v2731_v18  ;;  %v2094_v18 = vld [vmem:[%s2937_s2 + $0xc4] ss:$16 sps:$4 sm:$0xff]  }
 0x615   : > { %v1477_v61 = vmul.f32 %v2045_v32, %v1470_v31  ;;  %v1475_v0 = vadd.f32 0.5, %v1474_v5  ;;  %v2983_v32 = vld [vmem:[#allocation20_spill] sm:$0xff] }
 0x617   : > { %v2839_v62 = vadd.f32 %v1477_v61, %v1476_v13  ;;  %v2984_v61 = vld [vmem:[#allocation21_spill] sm:$0xff] }
 0x619   : > { %2048 = vtanh.f32 %v2839_v62 }
 0x623   : > { %v2049_v1 = vpop.eup %2048 }
 0x624   : > { %v1480_v2 = vmul.f32 %v2049_v1, %v1475_v0  ;;  %v2985_v0 = vld [vmem:[#allocation22_spill] sm:$0xff] }
 0x626   : > { %1903 = vst [vmem:[%s2190_s9 + $0x28] sm:$0xff] %v1480_v2  ;;  %v1488_v54 = vpack.c.bf16 %v1480_v2, %v1480_v2  ;;  %v2986_v2 = vld [vmem:[#allocation23_spill] sm:$0xff] }
 0x628   : > { %1522 = vmatmul.mubr.bf16.vlgmr.msra.gmra.mrb[40].mxu0 %v1488_v54  ;;  %1563 = vmatmul.mubr.bf16.vlgmr.msra.gmra.mrb[40].mxu1 %v1488_v54 }
 0x629   : > { %1602 = vmatpush1.bf16.msra.mxu0 %v2738_v45  ;;  %1643 = vmatpush1.bf16.msra.mxu1 %v2744_v53  ;;  %v2101_v45 = vld [vmem:[%s2937_s2 + $0xe8] ss:$16 sps:$4 sm:$0xff]  }
 0x62a   : > { %1603 = vmatprep.subr.bf16.mxu0 %v2750_v57  ;;  %1644 = vmatprep.subr.bf16.mxu1 %v2756_v4  ;;  %v2979_v4 = vld [vmem:[#allocation16_spill] sm:$0xff] }
 0x62b   : > { %1633 = vmatprep.mubr.bf16.mxu0 %v2965_v58  ;;  %1674 = vmatprep.mubr.bf16.mxu1 %v2965_v58  ;;  %v2085_v58 = vld [vmem:[%s2937_s2 + $0x68] ss:$16 sps:$4 sm:$0xff]  }
 0x62d   : > { %1604 = vmatpush1.bf16.msra.mxu0 %v2764_v56  ;;  %1645 = vmatpush1.bf16.msra.mxu1 %v2770_v14  ;;  %v2980_v14 = vld [vmem:[#allocation17_spill] sm:$0xff] }
 0x62e   : > { %1605 = vmatprep.subr.bf16.mxu0 %v2776_v16  ;;  %1646 = vmatprep.subr.bf16.mxu1 %v2782_v60 }
 0x631   : > { %1606 = vmatpush1.bf16.msra.mxu0 %v2788_v59  ;;  %1647 = vmatpush1.bf16.msra.mxu1 %v2794_v21  ;;  %v2981_v21 = vld [vmem:[#allocation18_spill] sm:$0xff] }
 0x632   : > { %1607 = vmatprep.subr.bf16.mxu0 %v2800_v22  ;;  %1648 = vmatprep.subr.bf16.mxu1 %v2806_v23  ;;  %v2982_v23 = vld [vmem:[#allocation19_spill] sm:$0xff] }
 0x635   : > { %1608 = vmatpush1.bf16.msra.mxu0 %v2812_v24  ;;  %1649 = vmatpush1.bf16.msra.mxu1 %v2085_v58 }
 0x636   : > { %1609 = vmatprep.subr.bf16.mxu0 %v2086_v6  ;;  %1650 = vmatprep.subr.bf16.mxu1 %v2087_v7 }
 0x639   : > { %1610 = vmatpush1.bf16.msra.mxu0 %v2088_v9  ;;  %1651 = vmatpush1.bf16.msra.mxu1 %v2089_v52 }
 0x63a   : > { %1611 = vmatprep.subr.bf16.mxu0 %v2090_v3  ;;  %1652 = vmatprep.subr.bf16.mxu1 %v2091_v15 }
 0x63d   : > { %1612 = vmatpush1.bf16.msra.mxu0 %v2092_v12  ;;  %1653 = vmatpush1.bf16.msra.mxu1 %v2093_v17 }
 0x63e   : > { %1613 = vmatprep.subr.bf16.mxu0 %v2094_v18  ;;  %1654 = vmatprep.subr.bf16.mxu1 %v2095_v10 }
 0x641   : > { %1614 = vmatpush1.bf16.msra.mxu0 %v2096_v27  ;;  %1655 = vmatpush1.bf16.msra.mxu1 %v2097_v36 }
 0x642   : > { %1615 = vmatprep.subr.bf16.mxu0 %v2098_v11  ;;  %1656 = vmatprep.subr.bf16.mxu1 %v2099_v8 }
 0x645   : > { %1616 = vmatpush1.bf16.msra.mxu0 %v2100_v55  ;;  %1657 = vmatpush1.bf16.msra.mxu1 %v2101_v45 }
 0x6fb   : > { %v1523_v53 = vpop.f32.mrb[40].mxu0  ;;  %v1564_v57 = vpop.f32.mrb[40].mxu1 }
 0x6fc   : > { %v1571_v56 = vadd.f32 %v1523_v53, %v2979_v4  ;;  %v1573_v16 = vadd.f32 %v1564_v57, %v2980_v14  ;;  %v1525_v60 = vpop.f32.mrb[41].mxu0  ;;  %v1566_v59 = vpop.f32.mrb[41].mxu1 }
 0x6fd   : > { %v1572_v22 = vadd.f32 %v1525_v60, %v2981_v21  ;;  %v1574_v24 = vadd.f32 %v1566_v59, %v2982_v23  ;;  %v1527_v33 = vpop.f32.mrb[42].mxu0  ;;  %v1568_v34 = vpop.f32.mrb[42].mxu1 }
 0x6fe   : > { %v1575_v35 = vmul.f32 0.5, %v1571_v56  ;;  %v1528_v37 = vpop.f32.mrb[43].mxu0  ;;  %v1569_v38 = vpop.f32.mrb[43].mxu1 }
 0x6ff   : > { %v1579_v39 = vmul.f32 0.5, %v1572_v22  ;;  %v1584_v40 = vmul.f32 0.5, %v1574_v24 }
 0x700   : > { %2050 = vtanh.f32 %v1575_v35 }
 0x701   : > { %2052 = vtanh.f32 %v1579_v39 }
 0x702   : > { %2054 = vtanh.f32 %v1573_v16 }
 0x703   : > { %2056 = vtanh.f32 %v1584_v40 }
 0x70a   : > { %v2051_v41 = vpop.eup %2050 }
 0x70b   : > { %v2053_v42 = vpop.eup %2052  ;;  %v1577_v43 = vmul.f32 0.5, %v2051_v41 }
 0x70c   : > { %v1581_v44 = vmul.f32 0.5, %v2053_v42  ;;  %v2055_v48 = vpop.eup %2054 }
 0x70d   : > { %v1578_v46 = vadd.f32 0.5, %v1577_v43  ;;  %v2057_v19 = vpop.eup %2056 }
 0x70e   : > { %v1582_v47 = vadd.f32 0.5, %v1581_v44  ;;  %v1586_v20 = vmul.f32 0.5, %v2057_v19 }
 0x70f   : > { %v1588_v49 = vmul.f32 %v1578_v46, %v2839_v62 }
 0x710   : > { %v1589_v50 = vmul.f32 %v2055_v48, %v1582_v47  ;;  %v1587_v25 = vadd.f32 0.5, %v1586_v20 }
 0x712   : > { %v1590_v51 = vadd.f32 %v1589_v50, %v1588_v49 }
 0x714   : > { %2058 = vtanh.f32 %v1590_v51 }
 0x71e   : > { %v2059_v26 = vpop.eup %2058 }
 0x71f   : > { %v1592_v28 = vmul.f32 %v2059_v26, %v1587_v25 }
 0x721   : > { %1904 = vst [vmem:[%s2190_s9 + $0x30] sm:$0xff] %v1592_v28  ;;  %v1600_v29 = vpack.c.bf16 %v1592_v28, %v1592_v28 }
 0x723   : > { %1634 = vmatmul.mubr.bf16.vlgmr.msra.gmra.mrb[44].mxu0 %v1600_v29  ;;  %1675 = vmatmul.mubr.bf16.vlgmr.msra.gmra.mrb[44].mxu1 %v1600_v29 }
 0x7f6   : > { %v1635_v30 = vpop.f32.mrb[44].mxu0  ;;  %v1676_v31 = vpop.f32.mrb[44].mxu1 }
 0x7f7   : > { %v1683_v13 = vadd.f32 %v1635_v30, %v2983_v32  ;;  %v1685_v63 = vadd.f32 %v1676_v31, %v2984_v61  ;;  %v1637_v5 = vpop.f32.mrb[45].mxu0  ;;  %v1678_v62 = vpop.f32.mrb[45].mxu1 }
 0x7f8   : > { %v1684_v1 = vadd.f32 %v1637_v5, %v2985_v0  ;;  %v1686_v54 = vadd.f32 %v1678_v62, %v2986_v2  ;;  %v1639_v58 = vpop.f32.mrb[46].mxu0  ;;  %v1680_v6 = vpop.f32.mrb[46].mxu1 }
 0x7f9   : > { %v1687_v7 = vmul.f32 0.5, %v1683_v13  ;;  %v1640_v9 = vpop.f32.mrb[47].mxu0  ;;  %v1681_v52 = vpop.f32.mrb[47].mxu1 }
 0x7fa   : > { %v1691_v3 = vmul.f32 0.5, %v1684_v1  ;;  %v1696_v15 = vmul.f32 0.5, %v1686_v54 }
 0x7fb   : > { %2060 = vtanh.f32 %v1687_v7 }
 0x7fc   : > { %2062 = vtanh.f32 %v1691_v3 }
 0x7fd   : > { %2064 = vtanh.f32 %v1685_v63 }
 0x7fe   : > { %2066 = vtanh.f32 %v1696_v15 }
 0x805   : > { %v2061_v12 = vpop.eup %2060 }
 0x806   : > { %v2063_v17 = vpop.eup %2062  ;;  %v1689_v18 = vmul.f32 0.5, %v2061_v12 }
 0x807   : > { %v1693_v10 = vmul.f32 0.5, %v2063_v17  ;;  %v2065_v11 = vpop.eup %2064 }
 0x808   : > { %v1690_v27 = vadd.f32 0.5, %v1689_v18  ;;  %v2067_v53 = vpop.eup %2066 }
 0x809   : > { %v1694_v36 = vadd.f32 0.5, %v1693_v10  ;;  %v1698_v57 = vmul.f32 0.5, %v2067_v53 }
 0x80a   : > { %v1700_v8 = vmul.f32 %v1690_v27, %v1590_v51 }
 0x80b   : > { %v1701_v55 = vmul.f32 %v2065_v11, %v1694_v36  ;;  %v1699_v4 = vadd.f32 0.5, %v1698_v57 }
 0x80d   : > { %v1702_v45 = vadd.f32 %v1701_v55, %v1700_v8 }
 0x80f   : > { %2068 = vtanh.f32 %v1702_v45  ;;  %1708 = vst [vmem:[%s2941_s6] sm:$0xff] %v1702_v45 }
 0x819   : > { %v2069_v56 = vpop.eup %2068 }
 0x81a   : > { %v1704_v14 = vmul.f32 %v2069_v56, %v1699_v4 }
 0x81c   : > { %1905 = vst [vmem:[%s2190_s9 + $0x38] sm:$0xff] %v1704_v14  ;;  %1707 = vst [vmem:[%s2940_s5] sm:$0xff] %v1704_v14 }
 0x81d PF: > { %s17_s23 = sadd.s32 1, %s2124_s23   ;;  %s2987_s21 = smov %s2120_s22 }
 0x81e   : > { %p14_p6 = scmp.ge.s32.totalorder %s17_s23, 4   ;;  %s2988_s22 = smov %s2990_s24 }
 0x820   :  { %16 = sbr.rel (!%p14_p6) target bundleno = 2 (0x2), region = 108 }

</bundles_post_ra>
